<compile_context>
chip_gen: v5e
topology: v5e:2x2
jax: 0.10.0
libtpu: 0.0.40
codegen_flags: <defaults>
</compile_context>

<pallas_src>
import functools

import jax
import jax.numpy as jnp
import numpy as np
from jax.experimental import pallas as pl
from jax.experimental.pallas import tpu as pltpu  # noqa: F401  (TPU backend)


def _make_lstm_fc_kernel(num_layers: int, seq_len: int, hidden: int):
    """Stacked LSTM (batch=1) over time + final fc4 matmul, fully unrolled."""
    H = hidden

    def cell(gates, c_prev):
        # PyTorch gate order along lanes: [i, f, g, o].
        # One sigmoid pass + one tanh pass over the full (1, 4H) vector.
        sig = jax.nn.sigmoid(gates)
        tnh = jnp.tanh(gates)
        i_g = sig[:, 0:H]
        f_g = sig[:, H:2 * H]
        g_g = tnh[:, 2 * H:3 * H]
        o_g = sig[:, 3 * H:4 * H]
        c_new = f_g * c_prev + i_g * g_g
        h_new = o_g * jnp.tanh(c_new)
        return h_new, c_new

    def kernel(*args):
        # ---- unpack refs -------------------------------------------------
        x_ref = args[0]
        wih0_ref, whh0_ref, b0_ref = args[1], args[2], args[3]
        idx = 4
        upper_refs = []
        for _ in range(num_layers - 1):
            upper_refs.append((args[idx], args[idx + 1]))   # (W_stack, bias)
            idx += 2
        w4_ref, b4_ref = args[idx], args[idx + 1]
        out_ref, hn_ref, cn_ref = args[idx + 2], args[idx + 3], args[idx + 4]

        # ---- hoisted layer-0 input projection (one big MXU matmul) --------
        gates0_in = (
            jnp.dot(x_ref[...], wih0_ref[...],
                    preferred_element_type=jnp.float32)
            + b0_ref[...]
        )                                                     # (seq, 4H)

        whh0 = whh0_ref[...]                                  # (H, 4H)
        upper_w = [(w_ref[...], b_ref[...]) for (w_ref, b_ref) in upper_refs]

        h = [jnp.zeros((1, H), jnp.float32) for _ in range(num_layers)]
        c = [jnp.zeros((1, H), jnp.float32) for _ in range(num_layers)]
        top_h = []

        # ---- fully-unrolled wavefront over time ---------------------------
        for t in range(seq_len):
            # layer 0: input part precomputed, only the recurrent matmul here.
            g0 = gates0_in[t:t + 1, :] + jnp.dot(
                h[0], whh0, preferred_element_type=jnp.float32)
            h[0], c[0] = cell(g0, c[0])
            x_t = h[0]
            # upper layers: one fused matmul per step on concat([h_l, x_t]).
            for l in range(1, num_layers):
                w_stack, b_l = upper_w[l - 1]                 # (2H,4H), (1,4H)
                inp = jnp.concatenate([h[l], x_t], axis=1)    # (1, 2H)
                g_l = jnp.dot(inp, w_stack,
                              preferred_element_type=jnp.float32) + b_l
                h[l], c[l] = cell(g_l, c[l])
                x_t = h[l]
            top_h.append(x_t)

        # ---- fc4 over every frame: one (seq,H)@(H,out_pad) matmul ----------
        seq_h = jnp.concatenate(top_h, axis=0)                # (seq, H)
        out_ref[...] = (
            jnp.dot(seq_h, w4_ref[...], preferred_element_type=jnp.float32)
            + b4_ref[...]
        ).astype(out_ref.dtype)

        # ---- final states, one block store each ---------------------------
        hn_ref[...] = jnp.concatenate(h, axis=0)              # (L, H)
        cn_ref[...] = jnp.concatenate(c, axis=0)

    return kernel


def net_forward_pallas(x, params, *, num_layers, hidden, out_size):
    """x: (seq, in_size) float32. Returns (y, (h_n, c_n)) matching PyTorch."""
    seq_len = x.shape[0]
    H = hidden
    out_pad = ((out_size + 127) // 128) * 128   # lane-dense fc4 output slab

    flat_inputs = [jnp.asarray(x, jnp.float32)]

    # Layer 0: keep W_ih and W_hh separate (input projection is hoisted).
    w_ih0, w_hh0, b_ih0, b_hh0 = params["lstm"][0]
    flat_inputs.append(jnp.asarray(w_ih0.T, jnp.float32))                 # (in, 4H)
    flat_inputs.append(jnp.asarray(w_hh0.T, jnp.float32))                 # (H, 4H)
    flat_inputs.append(jnp.asarray((b_ih0 + b_hh0)[None, :], jnp.float32))  # (1, 4H)

    # Layers >= 1: stack [W_hh.T ; W_ih.T] so the per-step projection is one matmul.
    for l in range(1, num_layers):
        w_ih, w_hh, b_ih, b_hh = params["lstm"][l]
        w_stack = jnp.concatenate(
            [jnp.asarray(w_hh.T, jnp.float32), jnp.asarray(w_ih.T, jnp.float32)],
            axis=0)                                                        # (2H, 4H)
        flat_inputs.append(w_stack)
        flat_inputs.append(jnp.asarray((b_ih + b_hh)[None, :], jnp.float32))

    # fc4: pad columns to a full 128-lane slab (zero columns -> one unmasked store).
    w4, b4 = params["fc4"]
    w4_p = jnp.zeros((H, out_pad), jnp.float32).at[:, :out_size].set(
        jnp.asarray(w4.T, jnp.float32))
    b4_p = jnp.zeros((1, out_pad), jnp.float32).at[:, :out_size].set(
        jnp.asarray(b4, jnp.float32))
    flat_inputs += [w4_p, b4_p]

    kernel = _make_lstm_fc_kernel(num_layers, seq_len, H)

    y_pad, h_n, c_n = pl.pallas_call(
        kernel,
        out_shape=(
            jax.ShapeDtypeStruct((seq_len, out_pad), jnp.float32),
            jax.ShapeDtypeStruct((num_layers, H), jnp.float32),
            jax.ShapeDtypeStruct((num_layers, H), jnp.float32),
        ),
    )(*flat_inputs)

    y = y_pad[:, :out_size]
    # Match PyTorch shapes: out (seq, 1, out), h_n/c_n (num_layers, 1, hidden).
    return y.reshape(seq_len, 1, out_size), (
        h_n.reshape(num_layers, 1, H),
        c_n.reshape(num_layers, 1, H),
    )


# ---------------- pure-JAX reference (for a quick sanity check) -------------
def net_forward_ref(x, params, *, num_layers, hidden, out_size):
    seq_len = x.shape[0]
    inp = x
    h_n, c_n = [], []
    for l in range(num_layers):
        w_ih, w_hh, b_ih, b_hh = params["lstm"][l]
        H = hidden
        h = jnp.zeros((1, H), jnp.float32)
        c = jnp.zeros((1, H), jnp.float32)
        outs = []
        for t in range(seq_len):
            gates = inp[t:t + 1] @ w_ih.T + b_ih + h @ w_hh.T + b_hh
            i = jax.nn.sigmoid(gates[:, 0:H])
            f = jax.nn.sigmoid(gates[:, H:2 * H])
            g = jnp.tanh(gates[:, 2 * H:3 * H])
            o = jax.nn.sigmoid(gates[:, 3 * H:4 * H])
            c = f * c + i * g
            h = o * jnp.tanh(c)
            outs.append(h)
        inp = jnp.concatenate(outs, axis=0)
        h_n.append(h)
        c_n.append(c)
    w4, b4 = params["fc4"]
    y = inp @ w4.T + b4
    return y.reshape(seq_len, 1, out_size), (
        jnp.stack(h_n, 0), jnp.stack(c_n, 0))


if __name__ == "__main__":
    # Small shapes consistent with the module.
    in_size, hidden_size, out_size = 16, 32, 8
    nb_lstm_layers = 2
    seq_len = 8  # len(x); batch folded to 1 by x.view(len(x), 1, -1)

    keys = iter(jax.random.split(jax.random.PRNGKey(0), 32))
    nxt = lambda: next(keys)  # noqa: E731

    # Deterministic parameter init (uniform in [-k, k], like PyTorch defaults).
    k_lstm = 1.0 / np.sqrt(hidden_size)
    lstm_params = []
    for l in range(nb_lstm_layers):
        in_l = in_size if l == 0 else hidden_size
        w_ih = jax.random.uniform(nxt(), (4 * hidden_size, in_l), jnp.float32,
                                  -k_lstm, k_lstm)
        w_hh = jax.random.uniform(nxt(), (4 * hidden_size, hidden_size),
                                  jnp.float32, -k_lstm, k_lstm)
        b_ih = jax.random.uniform(nxt(), (4 * hidden_size,), jnp.float32,
                                  -k_lstm, k_lstm)
        b_hh = jax.random.uniform(nxt(), (4 * hidden_size,), jnp.float32,
                                  -k_lstm, k_lstm)
        lstm_params.append((w_ih, w_hh, b_ih, b_hh))

    k_fc4 = 1.0 / np.sqrt(hidden_size)
    w4 = jax.random.uniform(nxt(), (out_size, hidden_size), jnp.float32,
                            -k_fc4, k_fc4)
    b4 = jax.random.uniform(nxt(), (out_size,), jnp.float32, -k_fc4, k_fc4)
    # Note: fc1/fc2/fc3 exist in __init__ but are unused by forward — omitted.

    params = {"lstm": lstm_params, "fc4": (w4, b4)}

    # Input: x.view(len(x), 1, -1) -> we keep it as (seq, in_size).
    x = jax.random.normal(nxt(), (seq_len, in_size), jnp.float32)
    # h_state is passed but ignored by the PyTorch forward (LSTM uses zeros).

    fwd = functools.partial(net_forward_pallas, num_layers=nb_lstm_layers,
                            hidden=hidden_size, out_size=out_size)
    y, (h_n, c_n) = fwd(x, params)
    jax.block_until_ready((y, h_n, c_n))

    # Sanity check against pure-JAX reference.
    y_ref, (h_ref, c_ref) = net_forward_ref(
        x, params, num_layers=nb_lstm_layers, hidden=hidden_size,
        out_size=out_size)
    np.testing.assert_allclose(np.asarray(y), np.asarray(y_ref),
                               rtol=1e-4, atol=1e-5)
    np.testing.assert_allclose(np.asarray(h_n), np.asarray(h_ref),
                               rtol=1e-4, atol=1e-5)
    np.testing.assert_allclose(np.asarray(c_n), np.asarray(c_ref),
                               rtol=1e-4, atol=1e-5)

    assert y.shape == (seq_len, 1, out_size)
    assert h_n.shape == (nb_lstm_layers, 1, hidden_size)
    assert c_n.shape == (nb_lstm_layers, 1, hidden_size)
    print("KERNEL_OK")
</pallas_src>

<mosaic_0001>
module attributes {stable_mosaic.version = 11 : i64} {
  func.func @kernel(%arg0: memref<8x16xf32, #tpu.memory_space<vmem>>, %arg1: memref<16x128xf32, #tpu.memory_space<vmem>>, %arg2: memref<32x128xf32, #tpu.memory_space<vmem>>, %arg3: memref<1x128xf32, #tpu.memory_space<vmem>>, %arg4: memref<64x128xf32, #tpu.memory_space<vmem>>, %arg5: memref<1x128xf32, #tpu.memory_space<vmem>>, %arg6: memref<32x128xf32, #tpu.memory_space<vmem>>, %arg7: memref<1x128xf32, #tpu.memory_space<vmem>>, %arg8: memref<8x128xf32, #tpu.memory_space<vmem>>, %arg9: memref<2x32xf32, #tpu.memory_space<vmem>>, %arg10: memref<2x32xf32, #tpu.memory_space<vmem>>) attributes {dimension_semantics = [], scalar_prefetch = 0 : i64, scratch_operands = 0 : i64, tpu.core_type = #tpu.core_type<tc>} {
    %c0 = arith.constant 0 : index
    %c0_0 = arith.constant 0 : index
    %0 = vector.load %arg0[%c0, %c0_0] : memref<8x16xf32, #tpu.memory_space<vmem>>, vector<8x16xf32>
    %c0_1 = arith.constant 0 : index
    %c0_2 = arith.constant 0 : index
    %1 = vector.load %arg1[%c0_1, %c0_2] : memref<16x128xf32, #tpu.memory_space<vmem>>, vector<16x128xf32>
    %cst = arith.constant dense<0.000000e+00> : vector<8x128xf32>
    %2 = tpu.matmul %0, %1, %cst {dimension_numbers = #tpu.dot_dimension_numbers<[1], [0], [0], [1], [0, 0, 1, 1], [], []>} : vector<8x16xf32>, vector<16x128xf32>, vector<8x128xf32> -> vector<8x128xf32>
    %c0_3 = arith.constant 0 : index
    %c0_4 = arith.constant 0 : index
    %3 = vector.load %arg3[%c0_3, %c0_4] : memref<1x128xf32, #tpu.memory_space<vmem>>, vector<1x128xf32>
    %4 = vector.broadcast %3 : vector<1x128xf32> to vector<8x128xf32>
    %5 = arith.addf %2, %4 : vector<8x128xf32>
    %c0_5 = arith.constant 0 : index
    %c0_6 = arith.constant 0 : index
    %6 = vector.load %arg2[%c0_5, %c0_6] : memref<32x128xf32, #tpu.memory_space<vmem>>, vector<32x128xf32>
    %c0_7 = arith.constant 0 : index
    %c0_8 = arith.constant 0 : index
    %7 = vector.load %arg4[%c0_7, %c0_8] : memref<64x128xf32, #tpu.memory_space<vmem>>, vector<64x128xf32>
    %c0_9 = arith.constant 0 : index
    %c0_10 = arith.constant 0 : index
    %8 = vector.load %arg5[%c0_9, %c0_10] : memref<1x128xf32, #tpu.memory_space<vmem>>, vector<1x128xf32>
    %cst_11 = arith.constant 0.000000e+00 : f32
    %9 = vector.broadcast %cst_11 : f32 to vector<1x32xf32>
    %cst_12 = arith.constant 0.000000e+00 : f32
    %10 = vector.broadcast %cst_12 : f32 to vector<1x32xf32>
    %cst_13 = arith.constant 0.000000e+00 : f32
    %11 = vector.broadcast %cst_13 : f32 to vector<1x32xf32>
    %cst_14 = arith.constant 0.000000e+00 : f32
    %12 = vector.broadcast %cst_14 : f32 to vector<1x32xf32>
    %13 = vector.extract_strided_slice %5 {offsets = [0, 0], sizes = [1, 128], strides = [1, 1]} : vector<8x128xf32> to vector<1x128xf32>
    %cst_15 = arith.constant dense<0.000000e+00> : vector<1x128xf32>
    %14 = tpu.matmul %9, %6, %cst_15 {dimension_numbers = #tpu.dot_dimension_numbers<[1], [0], [0], [1], [0, 0, 1, 1], [], []>} : vector<1x32xf32>, vector<32x128xf32>, vector<1x128xf32> -> vector<1x128xf32>
    %15 = arith.addf %13, %14 : vector<1x128xf32>
    %16 = arith.negf %15 : vector<1x128xf32>
    %17 = math.exp %16 : vector<1x128xf32>
    %cst_16 = arith.constant 1.000000e+00 : f32
    %18 = vector.broadcast %cst_16 : f32 to vector<1x128xf32>
    %19 = arith.addf %18, %17 : vector<1x128xf32>
    %20 = arith.divf %18, %19 : vector<1x128xf32>
    %21 = math.tanh %15 : vector<1x128xf32>
    %22 = vector.extract_strided_slice %20 {offsets = [0, 0], sizes = [1, 32], strides = [1, 1]} : vector<1x128xf32> to vector<1x32xf32>
    %23 = vector.extract_strided_slice %20 {offsets = [0, 32], sizes = [1, 32], strides = [1, 1]} : vector<1x128xf32> to vector<1x32xf32>
    %24 = vector.extract_strided_slice %21 {offsets = [0, 64], sizes = [1, 32], strides = [1, 1]} : vector<1x128xf32> to vector<1x32xf32>
    %25 = vector.extract_strided_slice %20 {offsets = [0, 96], sizes = [1, 32], strides = [1, 1]} : vector<1x128xf32> to vector<1x32xf32>
    %26 = arith.mulf %23, %11 : vector<1x32xf32>
    %27 = arith.mulf %22, %24 : vector<1x32xf32>
    %28 = arith.addf %26, %27 : vector<1x32xf32>
    %29 = math.tanh %28 : vector<1x32xf32>
    %30 = arith.mulf %25, %29 : vector<1x32xf32>
    %31 = tpu.concatenate %10, %30 in 1 : vector<1x32xf32>, vector<1x32xf32> -> vector<1x64xf32>
    %cst_17 = arith.constant dense<0.000000e+00> : vector<1x128xf32>
    %32 = tpu.matmul %31, %7, %cst_17 {dimension_numbers = #tpu.dot_dimension_numbers<[1], [0], [0], [1], [0, 0, 1, 1], [], []>} : vector<1x64xf32>, vector<64x128xf32>, vector<1x128xf32> -> vector<1x128xf32>
    %33 = arith.addf %32, %8 : vector<1x128xf32>
    %34 = arith.negf %33 : vector<1x128xf32>
    %35 = math.exp %34 : vector<1x128xf32>
    %cst_18 = arith.constant 1.000000e+00 : f32
    %36 = vector.broadcast %cst_18 : f32 to vector<1x128xf32>
    %37 = arith.addf %36, %35 : vector<1x128xf32>
    %38 = arith.divf %36, %37 : vector<1x128xf32>
    %39 = math.tanh %33 : vector<1x128xf32>
    %40 = vector.extract_strided_slice %38 {offsets = [0, 0], sizes = [1, 32], strides = [1, 1]} : vector<1x128xf32> to vector<1x32xf32>
    %41 = vector.extract_strided_slice %38 {offsets = [0, 32], sizes = [1, 32], strides = [1, 1]} : vector<1x128xf32> to vector<1x32xf32>
    %42 = vector.extract_strided_slice %39 {offsets = [0, 64], sizes = [1, 32], strides = [1, 1]} : vector<1x128xf32> to vector<1x32xf32>
    %43 = vector.extract_strided_slice %38 {offsets = [0, 96], sizes = [1, 32], strides = [1, 1]} : vector<1x128xf32> to vector<1x32xf32>
    %44 = arith.mulf %41, %12 : vector<1x32xf32>
    %45 = arith.mulf %40, %42 : vector<1x32xf32>
    %46 = arith.addf %44, %45 : vector<1x32xf32>
    %47 = math.tanh %46 : vector<1x32xf32>
    %48 = arith.mulf %43, %47 : vector<1x32xf32>
    %49 = vector.extract_strided_slice %5 {offsets = [1, 0], sizes = [1, 128], strides = [1, 1]} : vector<8x128xf32> to vector<1x128xf32>
    %cst_19 = arith.constant dense<0.000000e+00> : vector<1x128xf32>
    %50 = tpu.matmul %30, %6, %cst_19 {dimension_numbers = #tpu.dot_dimension_numbers<[1], [0], [0], [1], [0, 0, 1, 1], [], []>} : vector<1x32xf32>, vector<32x128xf32>, vector<1x128xf32> -> vector<1x128xf32>
    %51 = arith.addf %49, %50 : vector<1x128xf32>
    %52 = arith.negf %51 : vector<1x128xf32>
    %53 = math.exp %52 : vector<1x128xf32>
    %cst_20 = arith.constant 1.000000e+00 : f32
    %54 = vector.broadcast %cst_20 : f32 to vector<1x128xf32>
    %55 = arith.addf %54, %53 : vector<1x128xf32>
    %56 = arith.divf %54, %55 : vector<1x128xf32>
    %57 = math.tanh %51 : vector<1x128xf32>
    %58 = vector.extract_strided_slice %56 {offsets = [0, 0], sizes = [1, 32], strides = [1, 1]} : vector<1x128xf32> to vector<1x32xf32>
    %59 = vector.extract_strided_slice %56 {offsets = [0, 32], sizes = [1, 32], strides = [1, 1]} : vector<1x128xf32> to vector<1x32xf32>
    %60 = vector.extract_strided_slice %57 {offsets = [0, 64], sizes = [1, 32], strides = [1, 1]} : vector<1x128xf32> to vector<1x32xf32>
    %61 = vector.extract_strided_slice %56 {offsets = [0, 96], sizes = [1, 32], strides = [1, 1]} : vector<1x128xf32> to vector<1x32xf32>
    %62 = arith.mulf %59, %28 : vector<1x32xf32>
    %63 = arith.mulf %58, %60 : vector<1x32xf32>
    %64 = arith.addf %62, %63 : vector<1x32xf32>
    %65 = math.tanh %64 : vector<1x32xf32>
    %66 = arith.mulf %61, %65 : vector<1x32xf32>
    %67 = tpu.concatenate %48, %66 in 1 : vector<1x32xf32>, vector<1x32xf32> -> vector<1x64xf32>
    %cst_21 = arith.constant dense<0.000000e+00> : vector<1x128xf32>
    %68 = tpu.matmul %67, %7, %cst_21 {dimension_numbers = #tpu.dot_dimension_numbers<[1], [0], [0], [1], [0, 0, 1, 1], [], []>} : vector<1x64xf32>, vector<64x128xf32>, vector<1x128xf32> -> vector<1x128xf32>
    %69 = arith.addf %68, %8 : vector<1x128xf32>
    %70 = arith.negf %69 : vector<1x128xf32>
    %71 = math.exp %70 : vector<1x128xf32>
    %cst_22 = arith.constant 1.000000e+00 : f32
    %72 = vector.broadcast %cst_22 : f32 to vector<1x128xf32>
    %73 = arith.addf %72, %71 : vector<1x128xf32>
    %74 = arith.divf %72, %73 : vector<1x128xf32>
    %75 = math.tanh %69 : vector<1x128xf32>
    %76 = vector.extract_strided_slice %74 {offsets = [0, 0], sizes = [1, 32], strides = [1, 1]} : vector<1x128xf32> to vector<1x32xf32>
    %77 = vector.extract_strided_slice %74 {offsets = [0, 32], sizes = [1, 32], strides = [1, 1]} : vector<1x128xf32> to vector<1x32xf32>
    %78 = vector.extract_strided_slice %75 {offsets = [0, 64], sizes = [1, 32], strides = [1, 1]} : vector<1x128xf32> to vector<1x32xf32>
    %79 = vector.extract_strided_slice %74 {offsets = [0, 96], sizes = [1, 32], strides = [1, 1]} : vector<1x128xf32> to vector<1x32xf32>
    %80 = arith.mulf %77, %46 : vector<1x32xf32>
    %81 = arith.mulf %76, %78 : vector<1x32xf32>
    %82 = arith.addf %80, %81 : vector<1x32xf32>
    %83 = math.tanh %82 : vector<1x32xf32>
    %84 = arith.mulf %79, %83 : vector<1x32xf32>
    %85 = vector.extract_strided_slice %5 {offsets = [2, 0], sizes = [1, 128], strides = [1, 1]} : vector<8x128xf32> to vector<1x128xf32>
    %cst_23 = arith.constant dense<0.000000e+00> : vector<1x128xf32>
    %86 = tpu.matmul %66, %6, %cst_23 {dimension_numbers = #tpu.dot_dimension_numbers<[1], [0], [0], [1], [0, 0, 1, 1], [], []>} : vector<1x32xf32>, vector<32x128xf32>, vector<1x128xf32> -> vector<1x128xf32>
    %87 = arith.addf %85, %86 : vector<1x128xf32>
    %88 = arith.negf %87 : vector<1x128xf32>
    %89 = math.exp %88 : vector<1x128xf32>
    %cst_24 = arith.constant 1.000000e+00 : f32
    %90 = vector.broadcast %cst_24 : f32 to vector<1x128xf32>
    %91 = arith.addf %90, %89 : vector<1x128xf32>
    %92 = arith.divf %90, %91 : vector<1x128xf32>
    %93 = math.tanh %87 : vector<1x128xf32>
    %94 = vector.extract_strided_slice %92 {offsets = [0, 0], sizes = [1, 32], strides = [1, 1]} : vector<1x128xf32> to vector<1x32xf32>
    %95 = vector.extract_strided_slice %92 {offsets = [0, 32], sizes = [1, 32], strides = [1, 1]} : vector<1x128xf32> to vector<1x32xf32>
    %96 = vector.extract_strided_slice %93 {offsets = [0, 64], sizes = [1, 32], strides = [1, 1]} : vector<1x128xf32> to vector<1x32xf32>
    %97 = vector.extract_strided_slice %92 {offsets = [0, 96], sizes = [1, 32], strides = [1, 1]} : vector<1x128xf32> to vector<1x32xf32>
    %98 = arith.mulf %95, %64 : vector<1x32xf32>
    %99 = arith.mulf %94, %96 : vector<1x32xf32>
    %100 = arith.addf %98, %99 : vector<1x32xf32>
    %101 = math.tanh %100 : vector<1x32xf32>
    %102 = arith.mulf %97, %101 : vector<1x32xf32>
    %103 = tpu.concatenate %84, %102 in 1 : vector<1x32xf32>, vector<1x32xf32> -> vector<1x64xf32>
    %cst_25 = arith.constant dense<0.000000e+00> : vector<1x128xf32>
    %104 = tpu.matmul %103, %7, %cst_25 {dimension_numbers = #tpu.dot_dimension_numbers<[1], [0], [0], [1], [0, 0, 1, 1], [], []>} : vector<1x64xf32>, vector<64x128xf32>, vector<1x128xf32> -> vector<1x128xf32>
    %105 = arith.addf %104, %8 : vector<1x128xf32>
    %106 = arith.negf %105 : vector<1x128xf32>
    %107 = math.exp %106 : vector<1x128xf32>
    %cst_26 = arith.constant 1.000000e+00 : f32
    %108 = vector.broadcast %cst_26 : f32 to vector<1x128xf32>
    %109 = arith.addf %108, %107 : vector<1x128xf32>
    %110 = arith.divf %108, %109 : vector<1x128xf32>
    %111 = math.tanh %105 : vector<1x128xf32>
    %112 = vector.extract_strided_slice %110 {offsets = [0, 0], sizes = [1, 32], strides = [1, 1]} : vector<1x128xf32> to vector<1x32xf32>
    %113 = vector.extract_strided_slice %110 {offsets = [0, 32], sizes = [1, 32], strides = [1, 1]} : vector<1x128xf32> to vector<1x32xf32>
    %114 = vector.extract_strided_slice %111 {offsets = [0, 64], sizes = [1, 32], strides = [1, 1]} : vector<1x128xf32> to vector<1x32xf32>
    %115 = vector.extract_strided_slice %110 {offsets = [0, 96], sizes = [1, 32], strides = [1, 1]} : vector<1x128xf32> to vector<1x32xf32>
    %116 = arith.mulf %113, %82 : vector<1x32xf32>
    %117 = arith.mulf %112, %114 : vector<1x32xf32>
    %118 = arith.addf %116, %117 : vector<1x32xf32>
    %119 = math.tanh %118 : vector<1x32xf32>
    %120 = arith.mulf %115, %119 : vector<1x32xf32>
    %121 = vector.extract_strided_slice %5 {offsets = [3, 0], sizes = [1, 128], strides = [1, 1]} : vector<8x128xf32> to vector<1x128xf32>
    %cst_27 = arith.constant dense<0.000000e+00> : vector<1x128xf32>
    %122 = tpu.matmul %102, %6, %cst_27 {dimension_numbers = #tpu.dot_dimension_numbers<[1], [0], [0], [1], [0, 0, 1, 1], [], []>} : vector<1x32xf32>, vector<32x128xf32>, vector<1x128xf32> -> vector<1x128xf32>
    %123 = arith.addf %121, %122 : vector<1x128xf32>
    %124 = arith.negf %123 : vector<1x128xf32>
    %125 = math.exp %124 : vector<1x128xf32>
    %cst_28 = arith.constant 1.000000e+00 : f32
    %126 = vector.broadcast %cst_28 : f32 to vector<1x128xf32>
    %127 = arith.addf %126, %125 : vector<1x128xf32>
    %128 = arith.divf %126, %127 : vector<1x128xf32>
    %129 = math.tanh %123 : vector<1x128xf32>
    %130 = vector.extract_strided_slice %128 {offsets = [0, 0], sizes = [1, 32], strides = [1, 1]} : vector<1x128xf32> to vector<1x32xf32>
    %131 = vector.extract_strided_slice %128 {offsets = [0, 32], sizes = [1, 32], strides = [1, 1]} : vector<1x128xf32> to vector<1x32xf32>
    %132 = vector.extract_strided_slice %129 {offsets = [0, 64], sizes = [1, 32], strides = [1, 1]} : vector<1x128xf32> to vector<1x32xf32>
    %133 = vector.extract_strided_slice %128 {offsets = [0, 96], sizes = [1, 32], strides = [1, 1]} : vector<1x128xf32> to vector<1x32xf32>
    %134 = arith.mulf %131, %100 : vector<1x32xf32>
    %135 = arith.mulf %130, %132 : vector<1x32xf32>
    %136 = arith.addf %134, %135 : vector<1x32xf32>
    %137 = math.tanh %136 : vector<1x32xf32>
    %138 = arith.mulf %133, %137 : vector<1x32xf32>
    %139 = tpu.concatenate %120, %138 in 1 : vector<1x32xf32>, vector<1x32xf32> -> vector<1x64xf32>
    %cst_29 = arith.constant dense<0.000000e+00> : vector<1x128xf32>
    %140 = tpu.matmul %139, %7, %cst_29 {dimension_numbers = #tpu.dot_dimension_numbers<[1], [0], [0], [1], [0, 0, 1, 1], [], []>} : vector<1x64xf32>, vector<64x128xf32>, vector<1x128xf32> -> vector<1x128xf32>
    %141 = arith.addf %140, %8 : vector<1x128xf32>
    %142 = arith.negf %141 : vector<1x128xf32>
    %143 = math.exp %142 : vector<1x128xf32>
    %cst_30 = arith.constant 1.000000e+00 : f32
    %144 = vector.broadcast %cst_30 : f32 to vector<1x128xf32>
    %145 = arith.addf %144, %143 : vector<1x128xf32>
    %146 = arith.divf %144, %145 : vector<1x128xf32>
    %147 = math.tanh %141 : vector<1x128xf32>
    %148 = vector.extract_strided_slice %146 {offsets = [0, 0], sizes = [1, 32], strides = [1, 1]} : vector<1x128xf32> to vector<1x32xf32>
    %149 = vector.extract_strided_slice %146 {offsets = [0, 32], sizes = [1, 32], strides = [1, 1]} : vector<1x128xf32> to vector<1x32xf32>
    %150 = vector.extract_strided_slice %147 {offsets = [0, 64], sizes = [1, 32], strides = [1, 1]} : vector<1x128xf32> to vector<1x32xf32>
    %151 = vector.extract_strided_slice %146 {offsets = [0, 96], sizes = [1, 32], strides = [1, 1]} : vector<1x128xf32> to vector<1x32xf32>
    %152 = arith.mulf %149, %118 : vector<1x32xf32>
    %153 = arith.mulf %148, %150 : vector<1x32xf32>
    %154 = arith.addf %152, %153 : vector<1x32xf32>
    %155 = math.tanh %154 : vector<1x32xf32>
    %156 = arith.mulf %151, %155 : vector<1x32xf32>
    %157 = vector.extract_strided_slice %5 {offsets = [4, 0], sizes = [1, 128], strides = [1, 1]} : vector<8x128xf32> to vector<1x128xf32>
    %cst_31 = arith.constant dense<0.000000e+00> : vector<1x128xf32>
    %158 = tpu.matmul %138, %6, %cst_31 {dimension_numbers = #tpu.dot_dimension_numbers<[1], [0], [0], [1], [0, 0, 1, 1], [], []>} : vector<1x32xf32>, vector<32x128xf32>, vector<1x128xf32> -> vector<1x128xf32>
    %159 = arith.addf %157, %158 : vector<1x128xf32>
    %160 = arith.negf %159 : vector<1x128xf32>
    %161 = math.exp %160 : vector<1x128xf32>
    %cst_32 = arith.constant 1.000000e+00 : f32
    %162 = vector.broadcast %cst_32 : f32 to vector<1x128xf32>
    %163 = arith.addf %162, %161 : vector<1x128xf32>
    %164 = arith.divf %162, %163 : vector<1x128xf32>
    %165 = math.tanh %159 : vector<1x128xf32>
    %166 = vector.extract_strided_slice %164 {offsets = [0, 0], sizes = [1, 32], strides = [1, 1]} : vector<1x128xf32> to vector<1x32xf32>
    %167 = vector.extract_strided_slice %164 {offsets = [0, 32], sizes = [1, 32], strides = [1, 1]} : vector<1x128xf32> to vector<1x32xf32>
    %168 = vector.extract_strided_slice %165 {offsets = [0, 64], sizes = [1, 32], strides = [1, 1]} : vector<1x128xf32> to vector<1x32xf32>
    %169 = vector.extract_strided_slice %164 {offsets = [0, 96], sizes = [1, 32], strides = [1, 1]} : vector<1x128xf32> to vector<1x32xf32>
    %170 = arith.mulf %167, %136 : vector<1x32xf32>
    %171 = arith.mulf %166, %168 : vector<1x32xf32>
    %172 = arith.addf %170, %171 : vector<1x32xf32>
    %173 = math.tanh %172 : vector<1x32xf32>
    %174 = arith.mulf %169, %173 : vector<1x32xf32>
    %175 = tpu.concatenate %156, %174 in 1 : vector<1x32xf32>, vector<1x32xf32> -> vector<1x64xf32>
    %cst_33 = arith.constant dense<0.000000e+00> : vector<1x128xf32>
    %176 = tpu.matmul %175, %7, %cst_33 {dimension_numbers = #tpu.dot_dimension_numbers<[1], [0], [0], [1], [0, 0, 1, 1], [], []>} : vector<1x64xf32>, vector<64x128xf32>, vector<1x128xf32> -> vector<1x128xf32>
    %177 = arith.addf %176, %8 : vector<1x128xf32>
    %178 = arith.negf %177 : vector<1x128xf32>
    %179 = math.exp %178 : vector<1x128xf32>
    %cst_34 = arith.constant 1.000000e+00 : f32
    %180 = vector.broadcast %cst_34 : f32 to vector<1x128xf32>
    %181 = arith.addf %180, %179 : vector<1x128xf32>
    %182 = arith.divf %180, %181 : vector<1x128xf32>
    %183 = math.tanh %177 : vector<1x128xf32>
    %184 = vector.extract_strided_slice %182 {offsets = [0, 0], sizes = [1, 32], strides = [1, 1]} : vector<1x128xf32> to vector<1x32xf32>
    %185 = vector.extract_strided_slice %182 {offsets = [0, 32], sizes = [1, 32], strides = [1, 1]} : vector<1x128xf32> to vector<1x32xf32>
    %186 = vector.extract_strided_slice %183 {offsets = [0, 64], sizes = [1, 32], strides = [1, 1]} : vector<1x128xf32> to vector<1x32xf32>
    %187 = vector.extract_strided_slice %182 {offsets = [0, 96], sizes = [1, 32], strides = [1, 1]} : vector<1x128xf32> to vector<1x32xf32>
    %188 = arith.mulf %185, %154 : vector<1x32xf32>
    %189 = arith.mulf %184, %186 : vector<1x32xf32>
    %190 = arith.addf %188, %189 : vector<1x32xf32>
    %191 = math.tanh %190 : vector<1x32xf32>
    %192 = arith.mulf %187, %191 : vector<1x32xf32>
    %193 = vector.extract_strided_slice %5 {offsets = [5, 0], sizes = [1, 128], strides = [1, 1]} : vector<8x128xf32> to vector<1x128xf32>
    %cst_35 = arith.constant dense<0.000000e+00> : vector<1x128xf32>
    %194 = tpu.matmul %174, %6, %cst_35 {dimension_numbers = #tpu.dot_dimension_numbers<[1], [0], [0], [1], [0, 0, 1, 1], [], []>} : vector<1x32xf32>, vector<32x128xf32>, vector<1x128xf32> -> vector<1x128xf32>
    %195 = arith.addf %193, %194 : vector<1x128xf32>
    %196 = arith.negf %195 : vector<1x128xf32>
    %197 = math.exp %196 : vector<1x128xf32>
    %cst_36 = arith.constant 1.000000e+00 : f32
    %198 = vector.broadcast %cst_36 : f32 to vector<1x128xf32>
    %199 = arith.addf %198, %197 : vector<1x128xf32>
    %200 = arith.divf %198, %199 : vector<1x128xf32>
    %201 = math.tanh %195 : vector<1x128xf32>
    %202 = vector.extract_strided_slice %200 {offsets = [0, 0], sizes = [1, 32], strides = [1, 1]} : vector<1x128xf32> to vector<1x32xf32>
    %203 = vector.extract_strided_slice %200 {offsets = [0, 32], sizes = [1, 32], strides = [1, 1]} : vector<1x128xf32> to vector<1x32xf32>
    %204 = vector.extract_strided_slice %201 {offsets = [0, 64], sizes = [1, 32], strides = [1, 1]} : vector<1x128xf32> to vector<1x32xf32>
    %205 = vector.extract_strided_slice %200 {offsets = [0, 96], sizes = [1, 32], strides = [1, 1]} : vector<1x128xf32> to vector<1x32xf32>
    %206 = arith.mulf %203, %172 : vector<1x32xf32>
    %207 = arith.mulf %202, %204 : vector<1x32xf32>
    %208 = arith.addf %206, %207 : vector<1x32xf32>
    %209 = math.tanh %208 : vector<1x32xf32>
    %210 = arith.mulf %205, %209 : vector<1x32xf32>
    %211 = tpu.concatenate %192, %210 in 1 : vector<1x32xf32>, vector<1x32xf32> -> vector<1x64xf32>
    %cst_37 = arith.constant dense<0.000000e+00> : vector<1x128xf32>
    %212 = tpu.matmul %211, %7, %cst_37 {dimension_numbers = #tpu.dot_dimension_numbers<[1], [0], [0], [1], [0, 0, 1, 1], [], []>} : vector<1x64xf32>, vector<64x128xf32>, vector<1x128xf32> -> vector<1x128xf32>
    %213 = arith.addf %212, %8 : vector<1x128xf32>
    %214 = arith.negf %213 : vector<1x128xf32>
    %215 = math.exp %214 : vector<1x128xf32>
    %cst_38 = arith.constant 1.000000e+00 : f32
    %216 = vector.broadcast %cst_38 : f32 to vector<1x128xf32>
    %217 = arith.addf %216, %215 : vector<1x128xf32>
    %218 = arith.divf %216, %217 : vector<1x128xf32>
    %219 = math.tanh %213 : vector<1x128xf32>
    %220 = vector.extract_strided_slice %218 {offsets = [0, 0], sizes = [1, 32], strides = [1, 1]} : vector<1x128xf32> to vector<1x32xf32>
    %221 = vector.extract_strided_slice %218 {offsets = [0, 32], sizes = [1, 32], strides = [1, 1]} : vector<1x128xf32> to vector<1x32xf32>
    %222 = vector.extract_strided_slice %219 {offsets = [0, 64], sizes = [1, 32], strides = [1, 1]} : vector<1x128xf32> to vector<1x32xf32>
    %223 = vector.extract_strided_slice %218 {offsets = [0, 96], sizes = [1, 32], strides = [1, 1]} : vector<1x128xf32> to vector<1x32xf32>
    %224 = arith.mulf %221, %190 : vector<1x32xf32>
    %225 = arith.mulf %220, %222 : vector<1x32xf32>
    %226 = arith.addf %224, %225 : vector<1x32xf32>
    %227 = math.tanh %226 : vector<1x32xf32>
    %228 = arith.mulf %223, %227 : vector<1x32xf32>
    %229 = vector.extract_strided_slice %5 {offsets = [6, 0], sizes = [1, 128], strides = [1, 1]} : vector<8x128xf32> to vector<1x128xf32>
    %cst_39 = arith.constant dense<0.000000e+00> : vector<1x128xf32>
    %230 = tpu.matmul %210, %6, %cst_39 {dimension_numbers = #tpu.dot_dimension_numbers<[1], [0], [0], [1], [0, 0, 1, 1], [], []>} : vector<1x32xf32>, vector<32x128xf32>, vector<1x128xf32> -> vector<1x128xf32>
    %231 = arith.addf %229, %230 : vector<1x128xf32>
    %232 = arith.negf %231 : vector<1x128xf32>
    %233 = math.exp %232 : vector<1x128xf32>
    %cst_40 = arith.constant 1.000000e+00 : f32
    %234 = vector.broadcast %cst_40 : f32 to vector<1x128xf32>
    %235 = arith.addf %234, %233 : vector<1x128xf32>
    %236 = arith.divf %234, %235 : vector<1x128xf32>
    %237 = math.tanh %231 : vector<1x128xf32>
    %238 = vector.extract_strided_slice %236 {offsets = [0, 0], sizes = [1, 32], strides = [1, 1]} : vector<1x128xf32> to vector<1x32xf32>
    %239 = vector.extract_strided_slice %236 {offsets = [0, 32], sizes = [1, 32], strides = [1, 1]} : vector<1x128xf32> to vector<1x32xf32>
    %240 = vector.extract_strided_slice %237 {offsets = [0, 64], sizes = [1, 32], strides = [1, 1]} : vector<1x128xf32> to vector<1x32xf32>
    %241 = vector.extract_strided_slice %236 {offsets = [0, 96], sizes = [1, 32], strides = [1, 1]} : vector<1x128xf32> to vector<1x32xf32>
    %242 = arith.mulf %239, %208 : vector<1x32xf32>
    %243 = arith.mulf %238, %240 : vector<1x32xf32>
    %244 = arith.addf %242, %243 : vector<1x32xf32>
    %245 = math.tanh %244 : vector<1x32xf32>
    %246 = arith.mulf %241, %245 : vector<1x32xf32>
    %247 = tpu.concatenate %228, %246 in 1 : vector<1x32xf32>, vector<1x32xf32> -> vector<1x64xf32>
    %cst_41 = arith.constant dense<0.000000e+00> : vector<1x128xf32>
    %248 = tpu.matmul %247, %7, %cst_41 {dimension_numbers = #tpu.dot_dimension_numbers<[1], [0], [0], [1], [0, 0, 1, 1], [], []>} : vector<1x64xf32>, vector<64x128xf32>, vector<1x128xf32> -> vector<1x128xf32>
    %249 = arith.addf %248, %8 : vector<1x128xf32>
    %250 = arith.negf %249 : vector<1x128xf32>
    %251 = math.exp %250 : vector<1x128xf32>
    %cst_42 = arith.constant 1.000000e+00 : f32
    %252 = vector.broadcast %cst_42 : f32 to vector<1x128xf32>
    %253 = arith.addf %252, %251 : vector<1x128xf32>
    %254 = arith.divf %252, %253 : vector<1x128xf32>
    %255 = math.tanh %249 : vector<1x128xf32>
    %256 = vector.extract_strided_slice %254 {offsets = [0, 0], sizes = [1, 32], strides = [1, 1]} : vector<1x128xf32> to vector<1x32xf32>
    %257 = vector.extract_strided_slice %254 {offsets = [0, 32], sizes = [1, 32], strides = [1, 1]} : vector<1x128xf32> to vector<1x32xf32>
    %258 = vector.extract_strided_slice %255 {offsets = [0, 64], sizes = [1, 32], strides = [1, 1]} : vector<1x128xf32> to vector<1x32xf32>
    %259 = vector.extract_strided_slice %254 {offsets = [0, 96], sizes = [1, 32], strides = [1, 1]} : vector<1x128xf32> to vector<1x32xf32>
    %260 = arith.mulf %257, %226 : vector<1x32xf32>
    %261 = arith.mulf %256, %258 : vector<1x32xf32>
    %262 = arith.addf %260, %261 : vector<1x32xf32>
    %263 = math.tanh %262 : vector<1x32xf32>
    %264 = arith.mulf %259, %263 : vector<1x32xf32>
    %265 = vector.extract_strided_slice %5 {offsets = [7, 0], sizes = [1, 128], strides = [1, 1]} : vector<8x128xf32> to vector<1x128xf32>
    %cst_43 = arith.constant dense<0.000000e+00> : vector<1x128xf32>
    %266 = tpu.matmul %246, %6, %cst_43 {dimension_numbers = #tpu.dot_dimension_numbers<[1], [0], [0], [1], [0, 0, 1, 1], [], []>} : vector<1x32xf32>, vector<32x128xf32>, vector<1x128xf32> -> vector<1x128xf32>
    %267 = arith.addf %265, %266 : vector<1x128xf32>
    %268 = arith.negf %267 : vector<1x128xf32>
    %269 = math.exp %268 : vector<1x128xf32>
    %cst_44 = arith.constant 1.000000e+00 : f32
    %270 = vector.broadcast %cst_44 : f32 to vector<1x128xf32>
    %271 = arith.addf %270, %269 : vector<1x128xf32>
    %272 = arith.divf %270, %271 : vector<1x128xf32>
    %273 = math.tanh %267 : vector<1x128xf32>
    %274 = vector.extract_strided_slice %272 {offsets = [0, 0], sizes = [1, 32], strides = [1, 1]} : vector<1x128xf32> to vector<1x32xf32>
    %275 = vector.extract_strided_slice %272 {offsets = [0, 32], sizes = [1, 32], strides = [1, 1]} : vector<1x128xf32> to vector<1x32xf32>
    %276 = vector.extract_strided_slice %273 {offsets = [0, 64], sizes = [1, 32], strides = [1, 1]} : vector<1x128xf32> to vector<1x32xf32>
    %277 = vector.extract_strided_slice %272 {offsets = [0, 96], sizes = [1, 32], strides = [1, 1]} : vector<1x128xf32> to vector<1x32xf32>
    %278 = arith.mulf %275, %244 : vector<1x32xf32>
    %279 = arith.mulf %274, %276 : vector<1x32xf32>
    %280 = arith.addf %278, %279 : vector<1x32xf32>
    %281 = math.tanh %280 : vector<1x32xf32>
    %282 = arith.mulf %277, %281 : vector<1x32xf32>
    %283 = tpu.concatenate %264, %282 in 1 : vector<1x32xf32>, vector<1x32xf32> -> vector<1x64xf32>
    %cst_45 = arith.constant dense<0.000000e+00> : vector<1x128xf32>
    %284 = tpu.matmul %283, %7, %cst_45 {dimension_numbers = #tpu.dot_dimension_numbers<[1], [0], [0], [1], [0, 0, 1, 1], [], []>} : vector<1x64xf32>, vector<64x128xf32>, vector<1x128xf32> -> vector<1x128xf32>
    %285 = arith.addf %284, %8 : vector<1x128xf32>
    %286 = arith.negf %285 : vector<1x128xf32>
    %287 = math.exp %286 : vector<1x128xf32>
    %cst_46 = arith.constant 1.000000e+00 : f32
    %288 = vector.broadcast %cst_46 : f32 to vector<1x128xf32>
    %289 = arith.addf %288, %287 : vector<1x128xf32>
    %290 = arith.divf %288, %289 : vector<1x128xf32>
    %291 = math.tanh %285 : vector<1x128xf32>
    %292 = vector.extract_strided_slice %290 {offsets = [0, 0], sizes = [1, 32], strides = [1, 1]} : vector<1x128xf32> to vector<1x32xf32>
    %293 = vector.extract_strided_slice %290 {offsets = [0, 32], sizes = [1, 32], strides = [1, 1]} : vector<1x128xf32> to vector<1x32xf32>
    %294 = vector.extract_strided_slice %291 {offsets = [0, 64], sizes = [1, 32], strides = [1, 1]} : vector<1x128xf32> to vector<1x32xf32>
    %295 = vector.extract_strided_slice %290 {offsets = [0, 96], sizes = [1, 32], strides = [1, 1]} : vector<1x128xf32> to vector<1x32xf32>
    %296 = arith.mulf %293, %262 : vector<1x32xf32>
    %297 = arith.mulf %292, %294 : vector<1x32xf32>
    %298 = arith.addf %296, %297 : vector<1x32xf32>
    %299 = math.tanh %298 : vector<1x32xf32>
    %300 = arith.mulf %295, %299 : vector<1x32xf32>
    %301 = tpu.concatenate %48, %84, %120, %156, %192, %228, %264, %300 in 0 : vector<1x32xf32>, vector<1x32xf32>, vector<1x32xf32>, vector<1x32xf32>, vector<1x32xf32>, vector<1x32xf32>, vector<1x32xf32>, vector<1x32xf32> -> vector<8x32xf32>
    %c0_47 = arith.constant 0 : index
    %c0_48 = arith.constant 0 : index
    %302 = vector.load %arg6[%c0_47, %c0_48] : memref<32x128xf32, #tpu.memory_space<vmem>>, vector<32x128xf32>
    %cst_49 = arith.constant dense<0.000000e+00> : vector<8x128xf32>
    %303 = tpu.matmul %301, %302, %cst_49 {dimension_numbers = #tpu.dot_dimension_numbers<[1], [0], [0], [1], [0, 0, 1, 1], [], []>} : vector<8x32xf32>, vector<32x128xf32>, vector<8x128xf32> -> vector<8x128xf32>
    %c0_50 = arith.constant 0 : index
    %c0_51 = arith.constant 0 : index
    %304 = vector.load %arg7[%c0_50, %c0_51] : memref<1x128xf32, #tpu.memory_space<vmem>>, vector<1x128xf32>
    %305 = vector.broadcast %304 : vector<1x128xf32> to vector<8x128xf32>
    %306 = arith.addf %303, %305 : vector<8x128xf32>
    %c0_52 = arith.constant 0 : index
    %c0_53 = arith.constant 0 : index
    %307 = vector.load %arg8[%c0_52, %c0_53] : memref<8x128xf32, #tpu.memory_space<vmem>>, vector<8x128xf32>
    tpu.vector_store %arg8[%c0_52, %c0_53], %306 {strides = array<i32>} : memref<8x128xf32, #tpu.memory_space<vmem>>, vector<8x128xf32>,
    %308 = tpu.concatenate %282, %300 in 0 : vector<1x32xf32>, vector<1x32xf32> -> vector<2x32xf32>
    %c0_54 = arith.constant 0 : index
    %c0_55 = arith.constant 0 : index
    %309 = vector.load %arg9[%c0_54, %c0_55] : memref<2x32xf32, #tpu.memory_space<vmem>>, vector<2x32xf32>
    tpu.vector_store %arg9[%c0_54, %c0_55], %308 {strides = array<i32>} : memref<2x32xf32, #tpu.memory_space<vmem>>, vector<2x32xf32>,
    %310 = tpu.concatenate %280, %298 in 0 : vector<1x32xf32>, vector<1x32xf32> -> vector<2x32xf32>
    %c0_56 = arith.constant 0 : index
    %c0_57 = arith.constant 0 : index
    %311 = vector.load %arg10[%c0_56, %c0_57] : memref<2x32xf32, #tpu.memory_space<vmem>>, vector<2x32xf32>
    tpu.vector_store %arg10[%c0_56, %c0_57], %310 {strides = array<i32>} : memref<2x32xf32, #tpu.memory_space<vmem>>, vector<2x32xf32>,
    return
  }
}

</mosaic_0001>

<bundles_post_ra>
// kernel: tpu_custom_call.1
= control target key start
LH: loop header
LB: loop body
LE: loop exit
PB: predicated region body
PF: predicated region fallthrough
CT: control target
= control target key end

     0   :  { %16 = vsyncpa [#allocation3], 0  ;;  %s2181_s0 = inlined_call_operand.hbm [shape: f32[8,16], index: 0, kind: input, shape index: {}]   ;;  %s2182_s1 = inlined_call_operand.hbm [shape: f32[16,128], index: 1, kind: input, shape index: {}]   ;;  %s2183_s2 = inlined_call_operand.hbm [shape: f32[32,128], index: 2, kind: input, shape index: {}]   ;;  %s2184_s3 = inlined_call_operand.vmem [shape: f32[1,128], index: 3, kind: input, shape index: {}]   ;;  %s2185_s4 = inlined_call_operand.hbm [shape: f32[64,128], index: 4, kind: input, shape index: {}]   ;;  %s2186_s5 = inlined_call_operand.vmem [shape: f32[1,128], index: 5, kind: input, shape index: {}]   ;;  %s2187_s6 = inlined_call_operand.hbm [shape: f32[32,128], index: 6, kind: input, shape index: {}]   ;;  %s2188_s7 = inlined_call_operand.vmem [shape: f32[1,128], index: 7, kind: input, shape index: {}]   ;;  %s2189_s8 = inlined_call_operand.hbm [shape: f32[8,128], index: 8, kind: output, shape index: {0}]   ;;  %s2190_s9 = inlined_call_operand.hbm [shape: f32[2,32], index: 9, kind: output, shape index: {1}]   ;;  %s2191_s10 = inlined_call_operand.hbm [shape: f32[2,32], index: 10, kind: output, shape index: {2}]  }
   0x1   :  { %17 = vsyncpa [#allocation6], 0 }
   0x2   :  { %18 = vsyncpa [#allocation9], 0 }
   0x3   :  { %19 = vsyncpa [#allocation4], 0  ;;  %s36_s15 = sshll.u32 %s2182_s1, 4  ;;  %s37_s15 = int_to_ptr.hbm [resolvable:$true] %s36_s15 }
   0x4   :  { %20 = vsyncpa [#allocation13], 0  ;;  %s1763_s16 = smov [#allocation5]   ;;  %s64_s20 = sshll.u32 %s2185_s4, 4  ;;  %s65_s20 = int_to_ptr.hbm [resolvable:$true] %s64_s20 }
   0x5   :  { %s38_s17 = sshll.u32 %s1763_s16, 4  ;;  %s1764_s21 = smov 128   ;;  %s39_s17 = int_to_ptr.vmem [resolvable:$true] %s38_s17 }
   0x6   :  { %s1765_s22 = smov 8   ;;  %s1766_s23 = smov [#allocation8]  }
   0x7   :  { %44 = dma.hbm_to_vmem [thread:$0]  %s37_s15, 256, %s39_s17, [#allocation6], %s1764_s21, %s1764_s21, %s1765_s22  }
   0x8   :  { %s66_s24 = sshll.u32 %s1766_s23, 4  ;;  %s26_s27 = sshll.u32 %s2181_s0, 4  ;;  %s67_s24 = int_to_ptr.vmem [resolvable:$true] %s66_s24  ;;  %s27_s27 = int_to_ptr.hbm [resolvable:$true] %s26_s27 }
   0x9   :  { %72 = dma.hbm_to_vmem [thread:$0]  %s65_s20, 1024, %s67_s24, [#allocation9], %s1764_s21, %s1764_s21, %s1765_s22  }
   0xa   :  { %s49_s29 = sshll.u32 %s2183_s2, 4  ;;  %s1767_s30 = smov [#allocation2]   ;;  %s50_s29 = int_to_ptr.hbm [resolvable:$true] %s49_s29 }
   0xb   :  { %s28_s11 = sshll.u32 %s1767_s30, 4  ;;  %s1768_s4 = smov [#allocation7]   ;;  %s29_s11 = int_to_ptr.vmem [resolvable:$true] %s28_s11 }
   0xc   :  { %31 = dma.hbm_to_vmem [thread:$0]  %s27_s27, 128, %s29_s11, [#allocation3]  }
   0xd   :  { %s51_s12 = sshll.u32 %s1768_s4, 4  ;;  %s79_s15 = sshll.u32 %s2187_s6, 4  ;;  %s52_s12 = int_to_ptr.vmem [resolvable:$true] %s51_s12  ;;  %s80_s15 = int_to_ptr.hbm [resolvable:$true] %s79_s15 }
   0xe   :  { %57 = dma.hbm_to_vmem [thread:$0]  %s50_s29, 512, %s52_s12, [#allocation6], %s1764_s21, %s1764_s21, %s1765_s22  }
   0xf   :  { %s1769_s0 = smov [#allocation10]  }
  0x10   :  { %s81_s16 = sshll.u32 %s1769_s0, 4  ;;  %s82_s16 = int_to_ptr.vmem [resolvable:$true] %s81_s16 }
  0x11   :  { %87 = dma.hbm_to_vmem [thread:$0]  %s80_s15, 512, %s82_s16, [#allocation9], %s1764_s21, %s1764_s21, %s1765_s22  }
  0x12   :  { %1753 = dma.done.wait [#allocation3], 128  }
  0x13   :  { %1754 = vsyncadd [#allocation3], 4294967168 }
  0x14   :  { %1755 = dma.done.wait [#allocation6], 768  }
  0x15   :  { %1756 = vsyncadd [#allocation6], 4294966528 }
  0x16   :  { %1757 = dma.done.wait [#allocation9], 1536  }
  0x17   :  { %1758 = vsyncadd [#allocation9], 4294965760  ;;  %v1847_v0 = vld [vmem:[#allocation7 + $0x18] sm:$0xff]  ;;  %v1849_v2 = vld [vmem:[#allocation7 + $0x10] sm:$0xff]  ;;  %vm117_vm0 = vcmask 130048   ;;  %v1770_v7 = vmov 0.0  }
  0x18   :  { %v112_v1 = vld [vmem:[#allocation5 + $0x8] sm:$0xff]  ;;  %170 = vmatpush.msra.mxu1 %v1847_v0  ;;  %v111_v3 = vld [vmem:[#allocation5] sm:$0xff]  ;;  %v110_v4 = vld [vmem:[#allocation2] sm:$0xff]  ;;  %298 = vmatpush.msra.mxu3 %v1847_v0  ;;  %s1771_s17 = smov 64   ;;  %vm154_vm5 = vcmask 261120   ;;  %vm221_vm6 = vcmask 523264  }
  0x19   :  { %135 = vmatpush.msra.mxu0 %v112_v1  ;;  %v1852_v5 = vld [vmem:[#allocation7 + $0x8] sm:$0xff]  ;;  %v1856_v6 = vld [vmem:[#allocation7] sm:$0xff]  ;;  %v1883_v33 = vld [vmem:[#allocation8 + $0x38] sm:$0xff]  ;;  %s1774_s22 = smov [#allocation12]   ;;  %s1351_s26 = sshll.u32 %s2190_s9, 4  ;;  %s1352_s26 = int_to_ptr.hbm [resolvable:$true] %s1351_s26 }
  0x1a   :  { %171 = vmatpush.msra.mxu1 %v1849_v2  ;;  %299 = vmatpush.msra.mxu3 %v1849_v2  ;;  %v1430_v8 = vld [vmem:[%s2184_s3] ss:$0 sm:$0xff]  ;;  %s1772_s3 = smov 32   ;;  %v1885_v34 = vld [vmem:[#allocation8 + $0x30] sm:$0xff]  ;;  %v1894_v36 = vld [vmem:[#allocation8 + $0x20] sm:$0xff]  ;;  %s1349_s23 = sshll.u32 %s1774_s22, 4  ;;  %s1350_s23 = int_to_ptr.vmem [resolvable:$true] %s1349_s23 }
  0x1b   :  { %136 = vmatpush.msra.mxu0 %v111_v3  ;;  %233 = vmatpush.msra.mxu2 %v1883_v33  ;;  %v1889_v35 = vld [vmem:[#allocation8 + $0x28] sm:$0xff]  ;;  %v1899_v37 = vld [vmem:[#allocation8 + $0x18] sm:$0xff]  ;;  %v1904_v38 = vld [vmem:[#allocation8 + $0x10] sm:$0xff]  ;;  %s1775_s27 = smov [#allocation14]   ;;  %s1362_s30 = sshll.u32 %s2191_s10, 4  ;;  %s1363_s30 = int_to_ptr.hbm [resolvable:$true] %s1362_s30 }
  0x1c   :  { %1383 = vmatmul.msk.f32.vlgmr.msra.gmra.mxu0 %vm117_vm0, %v110_v4  ;;  %172 = vmatpush.msra.mxu1 %v1852_v5  ;;  %v1909_v39 = vld [vmem:[#allocation8 + $0x8] sm:$0xff]  ;;  %v1920_v42 = vld [vmem:[#allocation8] sm:$0xff]  ;;  %s1360_s1 = sshll.u32 %s1775_s27, 4  ;;  %s1776_s9 = smov [#allocation11]   ;;  %s1361_s1 = int_to_ptr.vmem [resolvable:$true] %s1360_s1 }
  0x1d   :  { %300 = vmatpush.msra.mxu3 %v1852_v5  ;;  %371 = vmatpush.msrb.mxu0 %v1883_v33  ;;  %v1951_v46 = vld [vmem:[%s2186_s5] sm:$0x1]  ;;  %s1338_s12 = sshll.u32 %s1776_s9, 4  ;;  %s1340_s15 = sshll.u32 %s2189_s8, 4  ;;  %s1339_s12 = int_to_ptr.vmem [resolvable:$true] %s1338_s12  ;;  %s1341_s15 = int_to_ptr.hbm [resolvable:$true] %s1340_s15 }
  0x1e   :  { %173 = vmatpush.msra.mxu1 %v1856_v6  ;;  %234 = vmatpush.msra.mxu2 %v1885_v34 }
  0x1f   :  { %174 = vmatmul.f32.vlgmr.msra.gmra.mxu1 %v1770_v7  ;;  %301 = vmatpush.msra.mxu3 %v1856_v6 }
  0x20   :  { %436 = vmatpush.msrb.mxu1 %v1847_v0  ;;  %372 = vmatpush.msrb.mxu0 %v1885_v34 }
  0x21   :  { %509 = vmatpush.msrb.mxu3 %v1883_v33  ;;  %235 = vmatpush.msra.mxu2 %v1889_v35 }
  0x22   :  { %437 = vmatpush.msrb.mxu1 %v1849_v2  ;;  %373 = vmatpush.msrb.mxu0 %v1889_v35 }
  0x23   :  { %510 = vmatpush.msrb.mxu3 %v1885_v34  ;;  %236 = vmatpush.msra.mxu2 %v1894_v36 }
  0x24   :  { %438 = vmatpush.msrb.mxu1 %v1852_v5  ;;  %374 = vmatpush.msrb.mxu0 %v1894_v36 }
  0x25   :  { %511 = vmatpush.msrb.mxu3 %v1889_v35  ;;  %237 = vmatpush.msra.mxu2 %v1899_v37 }
  0x26   :  { %439 = vmatpush.msrb.mxu1 %v1856_v6  ;;  %375 = vmatpush.msrb.mxu0 %v1899_v37 }
  0x27   :  { %512 = vmatpush.msrb.mxu3 %v1894_v36  ;;  %238 = vmatpush.msra.mxu2 %v1904_v38 }
  0x28   :  { %574 = vmatpush.msra.mxu1 %v1847_v0  ;;  %376 = vmatpush.msrb.mxu0 %v1904_v38 }
  0x29   :  { %513 = vmatpush.msrb.mxu3 %v1899_v37  ;;  %239 = vmatpush.msra.mxu2 %v1909_v39 }
  0x2a   :  { %575 = vmatpush.msra.mxu1 %v1849_v2  ;;  %377 = vmatpush.msrb.mxu0 %v1909_v39 }
  0x2b   :  { %514 = vmatpush.msrb.mxu3 %v1904_v38  ;;  %240 = vmatpush.msra.mxu2 %v1920_v42 }
  0x2c   :  { %576 = vmatpush.msra.mxu1 %v1852_v5  ;;  %378 = vmatpush.msrb.mxu0 %v1920_v42 }
  0x2d   :  { %515 = vmatpush.msrb.mxu3 %v1909_v39  ;;  %647 = vmatpush.msrb.mxu2 %v1883_v33 }
  0x2e   :  { %577 = vmatpush.msra.mxu1 %v1856_v6  ;;  %712 = vmatpush.msra.mxu0 %v1847_v0 }
  0x2f   :  { %516 = vmatpush.msrb.mxu3 %v1920_v42  ;;  %648 = vmatpush.msrb.mxu2 %v1885_v34 }
  0x30   :  { %713 = vmatpush.msra.mxu0 %v1849_v2 }
  0x31   :  { %649 = vmatpush.msrb.mxu2 %v1889_v35 }
  0x32   :  { %714 = vmatpush.msra.mxu0 %v1852_v5 }
  0x33   :  { %650 = vmatpush.msrb.mxu2 %v1894_v36 }
  0x34   :  { %715 = vmatpush.msra.mxu0 %v1856_v6 }
  0x35   :  { %651 = vmatpush.msrb.mxu2 %v1899_v37 }
  0x37   :  { %652 = vmatpush.msrb.mxu2 %v1904_v38 }
  0x39   :  { %653 = vmatpush.msrb.mxu2 %v1909_v39 }
  0x3b   :  { %654 = vmatpush.msrb.mxu2 %v1920_v42 }
  0x99   :  { %v138_v9 = vpop.f32.mrf.mxu0 }
  0x9a   :  { %v1874_v10 = vadd.f32 %v1430_v8, %v138_v9 }
  0x9c   :  { %v175_v11 = vpop.f32.mrf.mxu1 }
  0x9d   :  { %v178_v12 = vadd.f32 %v175_v11, %v1874_v10 }
  0x9f   :  { %1432 = vtanh.f32 %v178_v12  ;;  %v1384_v14 = vmul.f32 -1.442695, %v178_v12 }
  0xa1   :  { %1434 = vpow2.f32 %v1384_v14 }
  0xa5   :  { %v1433_v13 = vpop.eup %1432 }
  0xa6   :  { %201 = vrot.lane.b32.xlu0 %v1433_v13, %s1771_s17 }
  0xa7   :  { %v1435_v15 = vpop.eup %1434 }
  0xa8   :  { %v182_v16 = vadd.f32 1.0, %v1435_v15 }
  0xaa   :  { %1436 = vrcp.f32 %v182_v16  ;;  %v194_v22 = vand.u32 2147483648, %v182_v16  ;;  %vm188_vm2 = vweird.f32 %v182_v16  ;;  %v192_v23 = vand.u32 2147483647, %v182_v16 }
  0xac   :  { %v195_v25 = vor.u32 1.1754944e-38, %v194_v22  ;;  %vm193_vm4 = vcmp.eq.f32.partialorder %v192_v23, 8.507059e+37 }
  0xb0   :  { %v1437_v17 = vpop.eup %1436 }
  0xb1   :  { %v184_v18 = vmul.f32 %v1437_v17, %v182_v16  ;;  %vm189_vm1 = vweird.f32 %v1437_v17 }
  0xb2   :  { %vm190_vm3 = vmor %vm188_vm2, %vm189_vm1 }
  0xb3   :  { %v185_v19 = vsub.f32 1.0, %v184_v18 }
  0xb5   :  { %v186_v20 = vmul.f32 %v1437_v17, %v185_v19 }
  0xb7   :  { %v187_v21 = vadd.f32 %v1437_v17, %v186_v20 }
  0xb9   :  { %v191_v24 = vsel %vm190_vm3, %v1437_v17, %v187_v21 }
  0xba   :  { %v196_v27 = vsel %vm193_vm4, %v195_v25, %v191_v24 }
  0xbb   :  { %v199_v29 = vmul.f32 0.0, %v196_v27 }
 0x118   :  { %v202_v26 = vpop.permute.xlu0 %201 }
 0x119   :  { %v204_v28 = vmul.f32 %v202_v26, %v196_v27 }
 0x11b   :  { %206 = vrot.lane.b32.xlu0 %v204_v28, %s1772_s3 }
 0x18d   :  { %v207_v30 = vpop.permute.xlu0 %206 }
 0x18e   :  { %v1879_v31 = vadd.f32 %v207_v30, %v199_v29 }
 0x190   :  { %1438 = vtanh.f32 %v1879_v31  ;;  %v331_v29 = vrot.slane %v1879_v31, 7 }
 0x196   :  { %v1439_v32 = vpop.eup %1438 }
 0x197   :  { %212 = vrot.lane.b32.xlu1 %v1439_v32, %s1771_s17 }
 0x209   :  { %v213_v40 = vpop.permute.xlu1 %212 }
 0x20a   :  { %v215_v41 = vmul.f32 %v213_v40, %v196_v27 }
 0x20c   :  { %217 = vrot.lane.b32.xlu2 %v215_v41, %s1771_s17  ;;  %282 = vrot.lane.b32.xlu1 %v215_v41, %s1772_s3 }
 0x266   :  { %v218_v43 = vpop.permute.xlu2 %217 }
 0x267   :  { %v220_v44 = vsel %vm154_vm5, 0.0, %v218_v43 }
 0x268   :  { %1385 = vmatmul.msk.f32.vlgmr.msra.gmra.mxu2 %vm221_vm6, %v220_v44 }
 0x269   :  { %988 = vmatpush.msra.mxu2 %v1847_v0 }
 0x26b   :  { %989 = vmatpush.msra.mxu2 %v1849_v2 }
 0x26d   :  { %990 = vmatpush.msra.mxu2 %v1852_v5 }
 0x26f   :  { %991 = vmatpush.msra.mxu2 %v1856_v6 }
 0x27e   :  { %v283_v45 = vpop.permute.xlu1 %282 }
 0x27f   :  { %1387 = vmatmul.msk.f32.vlgmr.msra.gmra.mxu3 %vm154_vm5, %v283_v45 }
 0x280   :  { %850 = vmatpush.msra.mxu3 %v1847_v0 }
 0x282   :  { %851 = vmatpush.msra.mxu3 %v1849_v2 }
 0x284   :  { %852 = vmatpush.msra.mxu3 %v1852_v5 }
 0x286   :  { %853 = vmatpush.msra.mxu3 %v1856_v6 }
 0x2eb   :  { %v242_v47 = vpop.f32.mrf.mxu2 }
 0x2ec   :  { %v243_v48 = vadd.f32 %v242_v47, %v1951_v46 }
 0x2ee   :  { %1440 = vtanh.f32 %v243_v48  ;;  %v1386_v54 = vmul.f32 -1.442695, %v243_v48 }
 0x2f4   :  { %v1441_v49 = vpop.eup %1440 }
 0x2f5   :  { %267 = vrot.lane.b32.xlu0 %v1441_v49, %s1771_s17 }
 0x302   :  { %v303_v50 = vpop.f32.mrf.mxu3 }
 0x303   :  { %v307_v51 = vrot.slane %v303_v50, 7 }
 0x305   :  { %v309_v52 = vadd.f32 %v307_v51, %v1874_v10 }
 0x307   :  { %1442 = vtanh.f32 %v309_v52  ;;  %v1388_v55 = vmul.f32 -1.442695, %v309_v52 }
 0x308   :  { %1444 = vpow2.f32 %v1386_v54 }
 0x309   :  { %1446 = vpow2.f32 %v1388_v55 }
 0x30d   :  { %v1443_v53 = vpop.eup %1442 }
 0x30e   :  { %335 = vrot.lane.b32.xlu2 %v1443_v53, %s1771_s17  ;;  %v1445_v56 = vpop.eup %1444 }
 0x30f   :  { %v1447_v57 = vpop.eup %1446  ;;  %v248_v58 = vadd.f32 1.0, %v1445_v56 }
 0x310   :  { %v313_v59 = vadd.f32 1.0, %v1447_v57 }
 0x311   :  { %1448 = vrcp.f32 %v248_v58  ;;  %v260_v9 = vand.u32 2147483648, %v248_v58  ;;  %vm254_vm9 = vweird.f32 %v248_v58  ;;  %v258_v12 = vand.u32 2147483647, %v248_v58 }
 0x312   :  { %1450 = vrcp.f32 %v313_v59  ;;  %v325_v13 = vand.u32 2147483648, %v313_v59  ;;  %vm319_vm11 = vweird.f32 %v313_v59  ;;  %v323_v14 = vand.u32 2147483647, %v313_v59 }
 0x313   :  { %v261_v16 = vor.u32 1.1754944e-38, %v260_v9  ;;  %vm259_vm13 = vcmp.eq.f32.partialorder %v258_v12, 8.507059e+37 }
 0x314   :  { %v326_v18 = vor.u32 1.1754944e-38, %v325_v13  ;;  %vm324_vm14 = vcmp.eq.f32.partialorder %v323_v14, 8.507059e+37 }
 0x317   :  { %v1449_v60 = vpop.eup %1448 }
 0x318   :  { %v1451_v61 = vpop.eup %1450  ;;  %v250_v62 = vmul.f32 %v1449_v60, %v248_v58  ;;  %vm255_vm7 = vweird.f32 %v1449_v60 }
 0x319   :  { %v315_v63 = vmul.f32 %v1451_v61, %v313_v59  ;;  %vm320_vm8 = vweird.f32 %v1451_v61  ;;  %vm256_vm10 = vmor %vm254_vm9, %vm255_vm7 }
 0x31a   :  { %v251_v1 = vsub.f32 1.0, %v250_v62  ;;  %vm321_vm12 = vmor %vm319_vm11, %vm320_vm8 }
 0x31b   :  { %v316_v3 = vsub.f32 1.0, %v315_v63 }
 0x31c   :  { %v252_v4 = vmul.f32 %v1449_v60, %v251_v1 }
 0x31d   :  { %v317_v7 = vmul.f32 %v1451_v61, %v316_v3 }
 0x31e   :  { %v253_v8 = vadd.f32 %v1449_v60, %v252_v4 }
 0x31f   :  { %v318_v11 = vadd.f32 %v1451_v61, %v317_v7 }
 0x320   :  { %v257_v15 = vsel %vm256_vm10, %v1449_v60, %v253_v8 }
 0x321   :  { %v322_v17 = vsel %vm321_vm12, %v1451_v61, %v318_v11  ;;  %v262_v20 = vsel %vm259_vm13, %v261_v16, %v257_v15 }
 0x322   :  { %v327_v23 = vsel %vm324_vm14, %v326_v18, %v322_v17  ;;  %v265_v25 = vmul.f32 0.0, %v262_v20 }
 0x323   :  { %v333_v30 = vmul.f32 %v331_v29, %v327_v23 }
 0x367   :  { %v268_v19 = vpop.permute.xlu0 %267 }
 0x368   :  { %v270_v21 = vmul.f32 %v268_v19, %v262_v20  ;;  %v336_v22 = vpop.permute.xlu2 %335 }
 0x369   :  { %v338_v24 = vmul.f32 %v336_v22, %v327_v23 }
 0x36a   :  { %272 = vrot.lane.b32.xlu2 %v270_v21, %s1772_s3 }
 0x36b   :  { %340 = vrot.lane.b32.xlu1 %v338_v24, %s1772_s3 }
 0x3c4   :  { %v273_v26 = vpop.permute.xlu2 %272 }
 0x3c5   :  { %v1959_v27 = vadd.f32 %v273_v26, %v265_v25 }
 0x3c7   :  { %1452 = vtanh.f32 %v1959_v27 }
 0x3cd   :  { %v1453_v28 = vpop.eup %1452 }
 0x3ce   :  { %278 = vrot.lane.b32.xlu1 %v1453_v28, %s1771_s17 }
 0x3dd   :  { %v341_v32 = vpop.permute.xlu1 %340 }
 0x3de   :  { %v1964_v40 = vadd.f32 %v341_v32, %v333_v30 }
 0x3e0   :  { %1454 = vtanh.f32 %v1964_v40  ;;  %v469_v32 = vrot.slane %v1964_v40, 7 }
 0x3e6   :  { %v1455_v41 = vpop.eup %1454 }
 0x3e7   :  { %346 = vrot.lane.b32.xlu0 %v1455_v41, %s1771_s17 }
 0x440   :  { %v279_v43 = vpop.permute.xlu1 %278 }
 0x441   :  { %v1968_v44 = vmul.f32 %v279_v43, %v262_v20 }
 0x443   :  { %351 = vrot.lane.b32.xlu0 %v1968_v44, %s1772_s3 }
 0x459   :  { %v347_v45 = vpop.permute.xlu0 %346 }
 0x45a   :  { %v349_v47 = vmul.f32 %v347_v45, %v327_v23 }
 0x45c   :  { %v355_v48 = vrot.slane %v349_v47, 1 }
 0x45e   :  { %356 = vrot.lane.b32.xlu1 %v355_v48, %s1771_s17  ;;  %420 = vrot.lane.b32.xlu2 %v355_v48, %s1772_s3 }
 0x4b5   :  { %v352_v49 = vpop.permute.xlu0 %351 }
 0x4b8   :  { %v421_v31 = vpop.permute.xlu2 %420 }
 0x4b9   :  { %1391 = vmatmul.msk.f32.vlgmr.msrb.gmra.mxu1 %vm154_vm5, %v421_v31 }
 0x4ba   :  { %785 = vmatpush.msrb.mxu1 %v1883_v33 }
 0x4bc   :  { %786 = vmatpush.msrb.mxu1 %v1885_v34 }
 0x4be   :  { %787 = vmatpush.msrb.mxu1 %v1889_v35 }
 0x4c0   :  { %788 = vmatpush.msrb.mxu1 %v1894_v36 }
 0x4c2   :  { %789 = vmatpush.msrb.mxu1 %v1899_v37 }
 0x4c4   :  { %790 = vmatpush.msrb.mxu1 %v1904_v38 }
 0x4c6   :  { %791 = vmatpush.msrb.mxu1 %v1909_v39 }
 0x4c8   :  { %792 = vmatpush.msrb.mxu1 %v1920_v42 }
 0x4d0   :  { %v357_v50 = vpop.permute.xlu1 %356 }
 0x4d1   :  { %v359_v51 = vsel %vm154_vm5, %v352_v49, %v357_v50 }
 0x4d2   :  { %1389 = vmatmul.msk.f32.vlgmr.msrb.gmra.mxu0 %vm221_vm6, %v359_v51 }
 0x4d3   :  { %923 = vmatpush.msrb.mxu0 %v1883_v33 }
 0x4d5   :  { %924 = vmatpush.msrb.mxu0 %v1885_v34 }
 0x4d7   :  { %925 = vmatpush.msrb.mxu0 %v1889_v35 }
 0x4d9   :  { %926 = vmatpush.msrb.mxu0 %v1894_v36 }
 0x4db   :  { %927 = vmatpush.msrb.mxu0 %v1899_v37 }
 0x4dd   :  { %928 = vmatpush.msrb.mxu0 %v1904_v38 }
 0x4df   :  { %929 = vmatpush.msrb.mxu0 %v1909_v39 }
 0x4e1   :  { %930 = vmatpush.msrb.mxu0 %v1920_v42 }
 0x536   :  { %v441_v52 = vpop.f32.mrf.mxu1 }
 0x537   :  { %v445_v53 = vrot.slane %v441_v52, 6 }
 0x539   :  { %v447_v54 = vadd.f32 %v445_v53, %v1874_v10 }
 0x53b   :  { %1456 = vtanh.f32 %v447_v54  ;;  %v1392_v59 = vmul.f32 -1.442695, %v447_v54 }
 0x541   :  { %v1457_v55 = vpop.eup %1456 }
 0x542   :  { %473 = vrot.lane.b32.xlu2 %v1457_v55, %s1771_s17 }
 0x54f   :  { %v380_v56 = vpop.f32.mrf.mxu0 }
 0x550   :  { %v381_v57 = vadd.f32 %v380_v56, %v1951_v46 }
 0x552   :  { %1458 = vtanh.f32 %v381_v57  ;;  %v1390_v15 = vmul.f32 -1.442695, %v381_v57 }
 0x553   :  { %1460 = vpow2.f32 %v1392_v59 }
 0x558   :  { %v1459_v58 = vpop.eup %1458 }
 0x559   :  { %405 = vrot.lane.b32.xlu0 %v1459_v58, %s1771_s17  ;;  %v1461_v60 = vpop.eup %1460 }
 0x55a   :  { %v451_v61 = vadd.f32 1.0, %v1461_v60 }
 0x55c   :  { %1462 = vrcp.f32 %v451_v61  ;;  %v463_v7 = vand.u32 2147483648, %v451_v61  ;;  %vm457_vm0 = vweird.f32 %v451_v61  ;;  %v461_v8 = vand.u32 2147483647, %v451_v61 }
 0x55d   :  { %1464 = vpow2.f32 %v1390_v15 }
 0x55e   :  { %v464_v11 = vor.u32 1.1754944e-38, %v463_v7  ;;  %vm462_vm2 = vcmp.eq.f32.partialorder %v461_v8, 8.507059e+37 }
 0x562   :  { %v1463_v62 = vpop.eup %1462 }
 0x563   :  { %v453_v63 = vmul.f32 %v1463_v62, %v451_v61  ;;  %vm458_vm15 = vweird.f32 %v1463_v62  ;;  %v1465_v16 = vpop.eup %1464 }
 0x564   :  { %vm459_vm1 = vmor %vm457_vm0, %vm458_vm15  ;;  %v386_v17 = vadd.f32 1.0, %v1465_v16 }
 0x565   :  { %v454_v1 = vsub.f32 1.0, %v453_v63 }
 0x566   :  { %1466 = vrcp.f32 %v386_v17  ;;  %v398_v23 = vand.u32 2147483648, %v386_v17  ;;  %vm392_vm4 = vweird.f32 %v386_v17  ;;  %v396_v24 = vand.u32 2147483647, %v386_v17 }
 0x567   :  { %v455_v3 = vmul.f32 %v1463_v62, %v454_v1 }
 0x568   :  { %v399_v26 = vor.u32 1.1754944e-38, %v398_v23  ;;  %vm397_vm8 = vcmp.eq.f32.partialorder %v396_v24, 8.507059e+37 }
 0x569   :  { %v456_v4 = vadd.f32 %v1463_v62, %v455_v3 }
 0x56b   :  { %v460_v9 = vsel %vm459_vm1, %v1463_v62, %v456_v4  ;;  %vm1263_vm1 = vcmask 1040384  }
 0x56c   :  { %v465_v13 = vsel %vm462_vm2, %v464_v11, %v460_v9  ;;  %v1467_v18 = vpop.eup %1466  ;;  %vm1265_vm2 = vcmask 1041408  }
 0x56d   :  { %v388_v19 = vmul.f32 %v1467_v18, %v386_v17  ;;  %vm393_vm3 = vweird.f32 %v1467_v18  ;;  %v471_v41 = vmul.f32 %v469_v32, %v465_v13 }
 0x56e   :  { %vm394_vm7 = vmor %vm392_vm4, %vm393_vm3 }
 0x56f   :  { %v389_v20 = vsub.f32 1.0, %v388_v19 }
 0x571   :  { %v390_v21 = vmul.f32 %v1467_v18, %v389_v20 }
 0x573   :  { %v391_v22 = vadd.f32 %v1467_v18, %v390_v21 }
 0x575   :  { %v395_v25 = vsel %vm394_vm7, %v1467_v18, %v391_v22 }
 0x576   :  { %v400_v29 = vsel %vm397_vm8, %v399_v26, %v395_v25 }
 0x577   :  { %v403_v48 = vmul.f32 %v400_v29, %v1959_v27 }
 0x59c   :  { %v474_v12 = vpop.permute.xlu2 %473 }
 0x59d   :  { %v476_v14 = vmul.f32 %v474_v12, %v465_v13 }
 0x59f   :  { %478 = vrot.lane.b32.xlu1 %v476_v14, %s1772_s3 }
 0x5cb   :  { %v406_v28 = vpop.permute.xlu0 %405 }
 0x5cc   :  { %v408_v30 = vmul.f32 %v406_v28, %v400_v29 }
 0x5ce   :  { %410 = vrot.lane.b32.xlu2 %v408_v30, %s1772_s3 }
 0x611   :  { %v479_v43 = vpop.permute.xlu1 %478 }
 0x612   :  { %v2000_v45 = vadd.f32 %v479_v43, %v471_v41 }
 0x614   :  { %1468 = vtanh.f32 %v2000_v45  ;;  %v607_v43 = vrot.slane %v2000_v45, 7 }
 0x61a   :  { %v1469_v47 = vpop.eup %1468 }
 0x61b   :  { %484 = vrot.lane.b32.xlu0 %v1469_v47, %s1771_s17 }
 0x628   :  { %v411_v31 = vpop.permute.xlu2 %410 }
 0x629   :  { %v2005_v49 = vadd.f32 %v411_v31, %v403_v48 }
 0x62b   :  { %1470 = vtanh.f32 %v2005_v49 }
 0x631   :  { %v1471_v50 = vpop.eup %1470 }
 0x632   :  { %416 = vrot.lane.b32.xlu1 %v1471_v50, %s1771_s17 }
 0x68d   :  { %v485_v40 = vpop.permute.xlu0 %484 }
 0x68e   :  { %v487_v51 = vmul.f32 %v485_v40, %v465_v13 }
 0x690   :  { %v493_v52 = vrot.slane %v487_v51, 2 }
 0x692   :  { %558 = vrot.lane.b32.xlu2 %v493_v52, %s1772_s3  ;;  %494 = vrot.lane.b32.xlu1 %v493_v52, %s1771_s17 }
 0x6a4   :  { %v417_v53 = vpop.permute.xlu1 %416 }
 0x6a5   :  { %v2011_v54 = vmul.f32 %v417_v53, %v400_v29 }
 0x6a7   :  { %489 = vrot.lane.b32.xlu0 %v2011_v54, %s1772_s3 }
 0x6ec   :  { %v559_v27 = vpop.permute.xlu2 %558 }
 0x6ed   :  { %1395 = vmatmul.msk.f32.vlgmr.msra.gmra.mxu1 %vm154_vm5, %v559_v27 }
 0x6ee   :  { %1126 = vmatpush.msra.mxu1 %v1847_v0 }
 0x6f0   :  { %1127 = vmatpush.msra.mxu1 %v1849_v2 }
 0x6f2   :  { %1128 = vmatpush.msra.mxu1 %v1852_v5 }
 0x6f4   :  { %1129 = vmatpush.msra.mxu1 %v1856_v6 }
 0x704   :  { %v495_v55 = vpop.permute.xlu1 %494 }
 0x719   :  { %v490_v56 = vpop.permute.xlu0 %489 }
 0x71a   :  { %v497_v57 = vsel %vm154_vm5, %v490_v56, %v495_v55  ;;  %v1248_v56 = vrot.slane %v2011_v54, 7 }
 0x71b   :  { %1393 = vmatmul.msk.f32.vlgmr.msrb.gmra.mxu3 %vm221_vm6, %v497_v57 }
 0x71c   :  { %1061 = vmatpush.msrb.mxu3 %v1883_v33 }
 0x71e   :  { %1062 = vmatpush.msrb.mxu3 %v1885_v34 }
 0x720   :  { %1063 = vmatpush.msrb.mxu3 %v1889_v35 }
 0x722   :  { %1064 = vmatpush.msrb.mxu3 %v1894_v36 }
 0x724   :  { %1065 = vmatpush.msrb.mxu3 %v1899_v37 }
 0x726   :  { %1066 = vmatpush.msrb.mxu3 %v1904_v38 }
 0x728   :  { %1067 = vmatpush.msrb.mxu3 %v1909_v39 }
 0x72a   :  { %1068 = vmatpush.msrb.mxu3 %v1920_v42 }
 0x76a   :  { %v579_v0 = vpop.f32.mrf.mxu1 }
 0x76b   :  { %v583_v2 = vrot.slane %v579_v0, 5 }
 0x76d   :  { %v585_v5 = vadd.f32 %v583_v2, %v1874_v10  ;;  %v1264_v2 = vsel %vm1263_vm1, %v1968_v44, %v1248_v56 }
 0x76f   :  { %1472 = vtanh.f32 %v585_v5  ;;  %v1396_v60 = vmul.f32 -1.442695, %v585_v5 }
 0x775   :  { %v1473_v6 = vpop.eup %1472 }
 0x776   :  { %611 = vrot.lane.b32.xlu2 %v1473_v6, %s1771_s17 }
 0x79e   :  { %v518_v58 = vpop.f32.mrf.mxu3 }
 0x79f   :  { %v519_v59 = vadd.f32 %v518_v58, %v1951_v46 }
 0x7a1   :  { %1474 = vtanh.f32 %v519_v59  ;;  %v1394_v17 = vmul.f32 -1.442695, %v519_v59 }
 0x7a2   :  { %1476 = vpow2.f32 %v1396_v60 }
 0x7a7   :  { %v1475_v61 = vpop.eup %1474 }
 0x7a8   :  { %543 = vrot.lane.b32.xlu0 %v1475_v61, %s1771_s17  ;;  %v1477_v62 = vpop.eup %1476 }
 0x7a9   :  { %v589_v63 = vadd.f32 1.0, %v1477_v62 }
 0x7ab   :  { %1478 = vrcp.f32 %v589_v63  ;;  %v601_v9 = vand.u32 2147483648, %v589_v63  ;;  %vm595_vm10 = vweird.f32 %v589_v63  ;;  %v599_v11 = vand.u32 2147483647, %v589_v63 }
 0x7ac   :  { %1480 = vpow2.f32 %v1394_v17 }
 0x7ad   :  { %v602_v13 = vor.u32 1.1754944e-38, %v601_v9  ;;  %vm600_vm12 = vcmp.eq.f32.partialorder %v599_v11, 8.507059e+37 }
 0x7b1   :  { %v1479_v1 = vpop.eup %1478 }
 0x7b2   :  { %v591_v3 = vmul.f32 %v1479_v1, %v589_v63  ;;  %vm596_vm9 = vweird.f32 %v1479_v1  ;;  %v1481_v18 = vpop.eup %1480 }
 0x7b3   :  { %vm597_vm11 = vmor %vm595_vm10, %vm596_vm9  ;;  %v524_v19 = vadd.f32 1.0, %v1481_v18 }
 0x7b4   :  { %v592_v4 = vsub.f32 1.0, %v591_v3 }
 0x7b5   :  { %1482 = vrcp.f32 %v524_v19  ;;  %v536_v25 = vand.u32 2147483648, %v524_v19  ;;  %vm530_vm14 = vweird.f32 %v524_v19  ;;  %v534_v26 = vand.u32 2147483647, %v524_v19 }
 0x7b6   :  { %v593_v7 = vmul.f32 %v1479_v1, %v592_v4 }
 0x7b7   :  { %v537_v29 = vor.u32 1.1754944e-38, %v536_v25  ;;  %vm535_vm0 = vcmp.eq.f32.partialorder %v534_v26, 8.507059e+37 }
 0x7b8   :  { %v594_v8 = vadd.f32 %v1479_v1, %v593_v7 }
 0x7ba   :  { %v598_v12 = vsel %vm597_vm11, %v1479_v1, %v594_v8 }
 0x7bb   :  { %v603_v15 = vsel %vm600_vm12, %v602_v13, %v598_v12  ;;  %v1483_v20 = vpop.eup %1482 }
 0x7bc   :  { %v526_v21 = vmul.f32 %v1483_v20, %v524_v19  ;;  %vm531_vm13 = vweird.f32 %v1483_v20  ;;  %v609_v47 = vmul.f32 %v607_v43, %v603_v15 }
 0x7bd   :  { %vm532_vm15 = vmor %vm530_vm14, %vm531_vm13  ;;  %vm1267_vm13 = vcmask 1042432  }
 0x7be   :  { %v527_v22 = vsub.f32 1.0, %v526_v21 }
 0x7c0   :  { %v528_v23 = vmul.f32 %v1483_v20, %v527_v22 }
 0x7c2   :  { %v529_v24 = vadd.f32 %v1483_v20, %v528_v23 }
 0x7c4   :  { %v533_v28 = vsel %vm532_vm15, %v1483_v20, %v529_v24 }
 0x7c5   :  { %v538_v32 = vsel %vm535_vm0, %v537_v29, %v533_v28 }
 0x7c6   :  { %v541_v40 = vmul.f32 %v538_v32, %v2005_v49 }
 0x7d0   :  { %v612_v14 = vpop.permute.xlu2 %611 }
 0x7d1   :  { %v614_v16 = vmul.f32 %v612_v14, %v603_v15 }
 0x7d3   :  { %616 = vrot.lane.b32.xlu1 %v614_v16, %s1772_s3 }
 0x81a   :  { %v544_v30 = vpop.permute.xlu0 %543 }
 0x81b   :  { %v546_v41 = vmul.f32 %v544_v30, %v538_v32 }
 0x81d   :  { %548 = vrot.lane.b32.xlu2 %v546_v41, %s1772_s3 }
 0x845   :  { %v617_v48 = vpop.permute.xlu1 %616 }
 0x846   :  { %v2037_v31 = vadd.f32 %v617_v48, %v609_v47 }
 0x848   :  { %1484 = vtanh.f32 %v2037_v31  ;;  %v745_v30 = vrot.slane %v2037_v31, 7 }
 0x84e   :  { %v1485_v50 = vpop.eup %1484 }
 0x84f   :  { %622 = vrot.lane.b32.xlu0 %v1485_v50, %s1771_s17 }
 0x877   :  { %v549_v51 = vpop.permute.xlu2 %548 }
 0x878   :  { %v2042_v52 = vadd.f32 %v549_v51, %v541_v40 }
 0x87a   :  { %1486 = vtanh.f32 %v2042_v52 }
 0x880   :  { %v1487_v53 = vpop.eup %1486 }
 0x881   :  { %554 = vrot.lane.b32.xlu1 %v1487_v53, %s1771_s17 }
 0x8c1   :  { %v623_v45 = vpop.permute.xlu0 %622 }
 0x8c2   :  { %v625_v27 = vmul.f32 %v623_v45, %v603_v15 }
 0x8c4   :  { %v631_v55 = vrot.slane %v625_v27, 3 }
 0x8c6   :  { %632 = vrot.lane.b32.xlu1 %v631_v55, %s1771_s17  ;;  %696 = vrot.lane.b32.xlu2 %v631_v55, %s1772_s3 }
 0x8f3   :  { %v555_v57 = vpop.permute.xlu1 %554 }
 0x8f4   :  { %v557_v0 = vmul.f32 %v555_v57, %v538_v32 }
 0x8f6   :  { %v1250_v49 = vrot.slane %v557_v0, 6  ;;  %627 = vrot.lane.b32.xlu0 %v557_v0, %s1772_s3 }
 0x8f8   :  { %v2052_v5 = vsel %vm1265_vm2, %v1264_v2, %v1250_v49 }
 0x920   :  { %v697_v6 = vpop.permute.xlu2 %696 }
 0x921   :  { %1399 = vmatmul.msk.f32.vlgmr.msra.gmra.mxu0 %vm154_vm5, %v697_v6 }
 0x938   :  { %v633_v58 = vpop.permute.xlu1 %632 }
 0x968   :  { %v628_v59 = vpop.permute.xlu0 %627 }
 0x969   :  { %v635_v60 = vsel %vm154_vm5, %v628_v59, %v633_v58 }
 0x96a   :  { %1397 = vmatmul.msk.f32.vlgmr.msrb.gmra.mxu2 %vm221_vm6, %v635_v60 }
 0x96b   :  { %1199 = vmatpush.msrb.mxu2 %v1883_v33 }
 0x96d   :  { %1200 = vmatpush.msrb.mxu2 %v1885_v34 }
 0x96f   :  { %1201 = vmatpush.msrb.mxu2 %v1889_v35 }
 0x971   :  { %1202 = vmatpush.msrb.mxu2 %v1894_v36 }
 0x973   :  { %1203 = vmatpush.msrb.mxu2 %v1899_v37 }
 0x975   :  { %1204 = vmatpush.msrb.mxu2 %v1904_v38 }
 0x977   :  { %1205 = vmatpush.msrb.mxu2 %v1909_v39 }
 0x979   :  { %1206 = vmatpush.msrb.mxu2 %v1920_v42 }
 0x99e   :  { %v717_v44 = vpop.f32.mrf.mxu0 }
 0x99f   :  { %v721_v54 = vrot.slane %v717_v44, 4 }
 0x9a1   :  { %v723_v61 = vadd.f32 %v721_v54, %v1874_v10 }
 0x9a3   :  { %1488 = vtanh.f32 %v723_v61  ;;  %v1400_v34 = vmul.f32 -1.442695, %v723_v61 }
 0x9a5   :  { %1490 = vpow2.f32 %v1400_v34 }
 0x9a9   :  { %v1489_v33 = vpop.eup %1488 }
 0x9aa   :  { %749 = vrot.lane.b32.xlu2 %v1489_v33, %s1771_s17 }
 0x9ab   :  { %v1491_v35 = vpop.eup %1490 }
 0x9ac   :  { %v727_v36 = vadd.f32 1.0, %v1491_v35 }
 0x9ae   :  { %1492 = vrcp.f32 %v727_v36  ;;  %v739_v4 = vand.u32 2147483648, %v727_v36  ;;  %vm733_vm4 = vweird.f32 %v727_v36  ;;  %v737_v7 = vand.u32 2147483647, %v727_v36 }
 0x9b0   :  { %v740_v9 = vor.u32 1.1754944e-38, %v739_v4  ;;  %vm738_vm8 = vcmp.eq.f32.partialorder %v737_v7, 8.507059e+37 }
 0x9b4   :  { %v1493_v62 = vpop.eup %1492 }
 0x9b5   :  { %v729_v39 = vmul.f32 %v1493_v62, %v727_v36  ;;  %vm734_vm3 = vweird.f32 %v1493_v62 }
 0x9b6   :  { %vm735_vm7 = vmor %vm733_vm4, %vm734_vm3 }
 0x9b7   :  { %v730_v42 = vsub.f32 1.0, %v729_v39 }
 0x9b9   :  { %v731_v1 = vmul.f32 %v1493_v62, %v730_v42 }
 0x9bb   :  { %v732_v3 = vadd.f32 %v1493_v62, %v731_v1 }
 0x9bd   :  { %v736_v8 = vsel %vm735_vm7, %v1493_v62, %v732_v3 }
 0x9be   :  { %v741_v12 = vsel %vm738_vm8, %v740_v9, %v736_v8 }
 0x9bf   :  { %v747_v32 = vmul.f32 %v745_v30, %v741_v12 }
 0x9ed   :  { %v656_v37 = vpop.f32.mrf.mxu2 }
 0x9ee   :  { %v657_v38 = vadd.f32 %v656_v37, %v1951_v46 }
 0x9f0   :  { %1494 = vtanh.f32 %v657_v38  ;;  %v1398_v14 = vmul.f32 -1.442695, %v657_v38 }
 0x9f2   :  { %1496 = vpow2.f32 %v1398_v14 }
 0x9f6   :  { %v1495_v63 = vpop.eup %1494 }
 0x9f7   :  { %681 = vrot.lane.b32.xlu0 %v1495_v63, %s1771_s17 }
 0x9f8   :  { %v1497_v15 = vpop.eup %1496 }
 0x9f9   :  { %v662_v16 = vadd.f32 1.0, %v1497_v15 }
 0x9fb   :  { %1498 = vrcp.f32 %v662_v16  ;;  %v674_v22 = vand.u32 2147483648, %v662_v16  ;;  %vm668_vm10 = vweird.f32 %v662_v16  ;;  %v672_v23 = vand.u32 2147483647, %v662_v16 }
 0x9fd   :  { %v675_v25 = vor.u32 1.1754944e-38, %v674_v22  ;;  %vm673_vm12 = vcmp.eq.f32.partialorder %v672_v23, 8.507059e+37 }
 0xa01   :  { %v1499_v17 = vpop.eup %1498 }
 0xa02   :  { %v664_v18 = vmul.f32 %v1499_v17, %v662_v16  ;;  %vm669_vm9 = vweird.f32 %v1499_v17 }
 0xa03   :  { %vm670_vm11 = vmor %vm668_vm10, %vm669_vm9  ;;  %vm1269_vm9 = vcmask 1043456  }
 0xa04   :  { %v750_v11 = vpop.permute.xlu2 %749  ;;  %v665_v19 = vsub.f32 1.0, %v664_v18 }
 0xa05   :  { %v752_v13 = vmul.f32 %v750_v11, %v741_v12 }
 0xa06   :  { %v666_v20 = vmul.f32 %v1499_v17, %v665_v19 }
 0xa07   :  { %754 = vrot.lane.b32.xlu1 %v752_v13, %s1772_s3 }
 0xa08   :  { %v667_v21 = vadd.f32 %v1499_v17, %v666_v20 }
 0xa0a   :  { %v671_v24 = vsel %vm670_vm11, %v1499_v17, %v667_v21 }
 0xa0b   :  { %v676_v28 = vsel %vm673_vm12, %v675_v25, %v671_v24 }
 0xa0c   :  { %v679_v48 = vmul.f32 %v676_v28, %v2042_v52 }
 0xa69   :  { %v682_v26 = vpop.permute.xlu0 %681 }
 0xa6a   :  { %v684_v29 = vmul.f32 %v682_v26, %v676_v28 }
 0xa6c   :  { %686 = vrot.lane.b32.xlu2 %v684_v29, %s1772_s3 }
 0xa79   :  { %v755_v41 = vpop.permute.xlu1 %754 }
 0xa7a   :  { %v2072_v43 = vadd.f32 %v755_v41, %v747_v32 }
 0xa7c   :  { %1500 = vtanh.f32 %v2072_v43  ;;  %v883_v20 = vrot.slane %v2072_v43, 7 }
 0xa82   :  { %v1501_v47 = vpop.eup %1500 }
 0xa83   :  { %760 = vrot.lane.b32.xlu0 %v1501_v47, %s1771_s17 }
 0xac6   :  { %v687_v50 = vpop.permute.xlu2 %686 }
 0xac7   :  { %v2077_v40 = vadd.f32 %v687_v50, %v679_v48 }
 0xac9   :  { %1502 = vtanh.f32 %v2077_v40 }
 0xacf   :  { %v1503_v51 = vpop.eup %1502 }
 0xad0   :  { %692 = vrot.lane.b32.xlu1 %v1503_v51, %s1771_s17 }
 0xaf5   :  { %v761_v31 = vpop.permute.xlu0 %760 }
 0xaf6   :  { %v763_v53 = vmul.f32 %v761_v31, %v741_v12 }
 0xaf8   :  { %v769_v45 = vrot.slane %v763_v53, 4 }
 0xafa   :  { %770 = vrot.lane.b32.xlu1 %v769_v45, %s1771_s17  ;;  %834 = vrot.lane.b32.xlu2 %v769_v45, %s1772_s3 }
 0xb42   :  { %v693_v27 = vpop.permute.xlu1 %692 }
 0xb43   :  { %v695_v55 = vmul.f32 %v693_v27, %v676_v28 }
 0xb45   :  { %v1252_v56 = vrot.slane %v695_v55, 5  ;;  %765 = vrot.lane.b32.xlu0 %v695_v55, %s1772_s3 }
 0xb47   :  { %v2085_v52 = vsel %vm1267_vm13, %v2052_v5, %v1252_v56 }
 0xb54   :  { %v835_v57 = vpop.permute.xlu2 %834 }
 0xb55   :  { %1403 = vmatmul.msk.f32.vlgmr.msra.gmra.mxu3 %vm154_vm5, %v835_v57 }
 0xb6c   :  { %v771_v0 = vpop.permute.xlu1 %770 }
 0xbb7   :  { %v766_v49 = vpop.permute.xlu0 %765 }
 0xbb8   :  { %v773_v2 = vsel %vm154_vm5, %v766_v49, %v771_v0 }
 0xbb9   :  { %1401 = vmatmul.msk.f32.vlgmr.msrb.gmra.mxu1 %vm221_vm6, %v773_v2 }
 0xbd8   :  { %v855_v6 = vpop.f32.mrf.mxu3 }
 0xbd9   :  { %v859_v58 = vrot.slane %v855_v6, 3 }
 0xbdb   :  { %v861_v59 = vadd.f32 %v859_v58, %v1874_v10 }
 0xbdd   :  { %1504 = vtanh.f32 %v861_v59  ;;  %v1404_v44 = vmul.f32 -1.442695, %v861_v59 }
 0xbdf   :  { %1506 = vpow2.f32 %v1404_v44 }
 0xbe3   :  { %v1505_v60 = vpop.eup %1504 }
 0xbe4   :  { %887 = vrot.lane.b32.xlu2 %v1505_v60, %s1771_s17 }
 0xbe5   :  { %v1507_v5 = vpop.eup %1506 }
 0xbe6   :  { %v865_v54 = vadd.f32 1.0, %v1507_v5 }
 0xbe8   :  { %1508 = vrcp.f32 %v865_v54  ;;  %v877_v38 = vand.u32 2147483648, %v865_v54  ;;  %vm871_vm15 = vweird.f32 %v865_v54  ;;  %v875_v39 = vand.u32 2147483647, %v865_v54 }
 0xbea   :  { %v878_v63 = vor.u32 1.1754944e-38, %v877_v38  ;;  %vm876_vm2 = vcmp.eq.f32.partialorder %v875_v39, 8.507059e+37 }
 0xbee   :  { %v1509_v61 = vpop.eup %1508 }
 0xbef   :  { %v867_v33 = vmul.f32 %v1509_v61, %v865_v54  ;;  %vm872_vm14 = vweird.f32 %v1509_v61 }
 0xbf0   :  { %vm873_vm0 = vmor %vm871_vm15, %vm872_vm14 }
 0xbf1   :  { %v868_v34 = vsub.f32 1.0, %v867_v33 }
 0xbf3   :  { %v869_v35 = vmul.f32 %v1509_v61, %v868_v34 }
 0xbf5   :  { %v870_v62 = vadd.f32 %v1509_v61, %v869_v35 }
 0xbf7   :  { %v874_v42 = vsel %vm873_vm0, %v1509_v61, %v870_v62 }
 0xbf8   :  { %v879_v3 = vsel %vm876_vm2, %v878_v63, %v874_v42 }
 0xbf9   :  { %v885_v24 = vmul.f32 %v883_v20, %v879_v3 }
 0xc36   :  { %v794_v36 = vpop.f32.mrf.mxu1 }
 0xc37   :  { %v795_v37 = vadd.f32 %v794_v36, %v1951_v46 }
 0xc39   :  { %1510 = vtanh.f32 %v795_v37  ;;  %v1402_v8 = vmul.f32 -1.442695, %v795_v37 }
 0xc3b   :  { %1512 = vpow2.f32 %v1402_v8 }
 0xc3e   :  { %v888_v1 = vpop.permute.xlu2 %887 }
 0xc3f   :  { %v1511_v4 = vpop.eup %1510  ;;  %v890_v7 = vmul.f32 %v888_v1, %v879_v3 }
 0xc40   :  { %819 = vrot.lane.b32.xlu0 %v1511_v4, %s1771_s17 }
 0xc41   :  { %892 = vrot.lane.b32.xlu1 %v890_v7, %s1772_s3  ;;  %v1513_v9 = vpop.eup %1512 }
 0xc42   :  { %v800_v11 = vadd.f32 1.0, %v1513_v9 }
 0xc44   :  { %1514 = vrcp.f32 %v800_v11  ;;  %v812_v17 = vand.u32 2147483648, %v800_v11  ;;  %vm806_vm4 = vweird.f32 %v800_v11  ;;  %v810_v18 = vand.u32 2147483647, %v800_v11 }
 0xc46   :  { %v813_v21 = vor.u32 1.1754944e-38, %v812_v17  ;;  %vm811_vm8 = vcmp.eq.f32.partialorder %v810_v18, 8.507059e+37 }
 0xc4a   :  { %v1515_v12 = vpop.eup %1514 }
 0xc4b   :  { %v802_v13 = vmul.f32 %v1515_v12, %v800_v11  ;;  %vm807_vm3 = vweird.f32 %v1515_v12 }
 0xc4c   :  { %vm808_vm7 = vmor %vm806_vm4, %vm807_vm3  ;;  %vm1271_vm3 = vcmask 1044480  }
 0xc4d   :  { %v803_v14 = vsub.f32 1.0, %v802_v13 }
 0xc4f   :  { %v804_v15 = vmul.f32 %v1515_v12, %v803_v14 }
 0xc51   :  { %v805_v16 = vadd.f32 %v1515_v12, %v804_v15 }
 0xc53   :  { %v809_v19 = vsel %vm808_vm7, %v1515_v12, %v805_v16 }
 0xc54   :  { %v814_v23 = vsel %vm811_vm8, %v813_v21, %v809_v19 }
 0xc55   :  { %v817_v30 = vmul.f32 %v814_v23, %v2077_v40 }
 0xcb2   :  { %v820_v22 = vpop.permute.xlu0 %819 }
 0xcb3   :  { %v822_v25 = vmul.f32 %v820_v22, %v814_v23  ;;  %v893_v26 = vpop.permute.xlu1 %892 }
 0xcb4   :  { %v2096_v28 = vadd.f32 %v893_v26, %v885_v24 }
 0xcb5   :  { %824 = vrot.lane.b32.xlu2 %v822_v25, %s1772_s3 }
 0xcb6   :  { %1516 = vtanh.f32 %v2096_v28  ;;  %v1021_v8 = vrot.slane %v2096_v28, 7 }
 0xcbc   :  { %v1517_v29 = vpop.eup %1516 }
 0xcbd   :  { %898 = vrot.lane.b32.xlu0 %v1517_v29, %s1771_s17 }
 0xd0f   :  { %v825_v32 = vpop.permute.xlu2 %824 }
 0xd10   :  { %v2102_v41 = vadd.f32 %v825_v32, %v817_v30 }
 0xd12   :  { %1518 = vtanh.f32 %v2102_v41 }
 0xd18   :  { %v1519_v43 = vpop.eup %1518 }
 0xd19   :  { %830 = vrot.lane.b32.xlu1 %v1519_v43, %s1771_s17 }
 0xd2f   :  { %v899_v47 = vpop.permute.xlu0 %898 }
 0xd30   :  { %v901_v48 = vmul.f32 %v899_v47, %v879_v3 }
 0xd32   :  { %v907_v50 = vrot.slane %v901_v48, 5 }
 0xd34   :  { %908 = vrot.lane.b32.xlu1 %v907_v50, %s1771_s17  ;;  %972 = vrot.lane.b32.xlu2 %v907_v50, %s1772_s3 }
 0xd8b   :  { %v831_v51 = vpop.permute.xlu1 %830 }
 0xd8c   :  { %v833_v31 = vmul.f32 %v831_v51, %v814_v23 }
 0xd8e   :  { %v1254_v53 = vrot.slane %v833_v31, 4  ;;  %v973_v40 = vpop.permute.xlu2 %972  ;;  %903 = vrot.lane.b32.xlu0 %v833_v31, %s1772_s3 }
 0xd8f   :  { %1407 = vmatmul.msk.f32.vlgmr.msra.gmra.mxu2 %vm154_vm5, %v973_v40 }
 0xd90   :  { %v2111_v45 = vsel %vm1269_vm9, %v2085_v52, %v1254_v53 }
 0xda6   :  { %v909_v27 = vpop.permute.xlu1 %908 }
 0xe00   :  { %v904_v55 = vpop.permute.xlu0 %903 }
 0xe01   :  { %v911_v56 = vsel %vm154_vm5, %v904_v55, %v909_v27 }
 0xe02   :  { %1405 = vmatmul.msk.f32.vlgmr.msrb.gmra.mxu0 %vm221_vm6, %v911_v56 }
 0xe12   :  { %v993_v57 = vpop.f32.mrf.mxu2 }
 0xe13   :  { %v997_v0 = vrot.slane %v993_v57, 2 }
 0xe15   :  { %v999_v49 = vadd.f32 %v997_v0, %v1874_v10 }
 0xe17   :  { %1520 = vtanh.f32 %v999_v49  ;;  %v1408_v6 = vmul.f32 -1.442695, %v999_v49 }
 0xe19   :  { %1522 = vpow2.f32 %v1408_v6 }
 0xe1d   :  { %v1521_v2 = vpop.eup %1520 }
 0xe1e   :  { %1025 = vrot.lane.b32.xlu2 %v1521_v2, %s1771_s17 }
 0xe1f   :  { %v1523_v58 = vpop.eup %1522 }
 0xe20   :  { %v1003_v59 = vadd.f32 1.0, %v1523_v58  ;;  %v2145_v58 = vld [vmem:[%s2186_s5] sm:$0x1]  ;;  %s1773_s5 = smov 96  }
 0xe22   :  { %1524 = vrcp.f32 %v1003_v59  ;;  %v1015_v61 = vand.u32 2147483648, %v1003_v59  ;;  %vm1009_vm11 = vweird.f32 %v1003_v59  ;;  %v1013_v33 = vand.u32 2147483647, %v1003_v59 }
 0xe24   :  { %v1016_v35 = vor.u32 1.1754944e-38, %v1015_v61  ;;  %vm1014_vm13 = vcmp.eq.f32.partialorder %v1013_v33, 8.507059e+37 }
 0xe28   :  { %v1525_v52 = vpop.eup %1524 }
 0xe29   :  { %v1005_v60 = vmul.f32 %v1525_v52, %v1003_v59  ;;  %vm1010_vm10 = vweird.f32 %v1525_v52 }
 0xe2a   :  { %vm1011_vm12 = vmor %vm1009_vm11, %vm1010_vm10 }
 0xe2b   :  { %v1006_v44 = vsub.f32 1.0, %v1005_v60 }
 0xe2d   :  { %v1007_v5 = vmul.f32 %v1525_v52, %v1006_v44 }
 0xe2f   :  { %v1008_v54 = vadd.f32 %v1525_v52, %v1007_v5 }
 0xe31   :  { %v1012_v34 = vsel %vm1011_vm12, %v1525_v52, %v1008_v54 }
 0xe32   :  { %v1017_v37 = vsel %vm1014_vm13, %v1016_v35, %v1012_v34 }
 0xe33   :  { %v1023_v9 = vmul.f32 %v1021_v8, %v1017_v37 }
 0xe78   :  { %v1026_v36 = vpop.permute.xlu2 %1025 }
 0xe79   :  { %v1028_v62 = vmul.f32 %v1026_v36, %v1017_v37 }
 0xe7b   :  { %1030 = vrot.lane.b32.xlu1 %v1028_v62, %s1772_s3 }
 0xe7f   :  { %v932_v38 = vpop.f32.mrf.mxu0 }
 0xe80   :  { %v933_v39 = vadd.f32 %v932_v38, %v1951_v46 }
 0xe82   :  { %1526 = vtanh.f32 %v933_v39  ;;  %v1406_v63 = vmul.f32 -1.442695, %v933_v39 }
 0xe84   :  { %1528 = vpow2.f32 %v1406_v63 }
 0xe88   :  { %v1527_v42 = vpop.eup %1526 }
 0xe89   :  { %957 = vrot.lane.b32.xlu0 %v1527_v42, %s1771_s17 }
 0xe8a   :  { %v1529_v1 = vpop.eup %1528 }
 0xe8b   :  { %v938_v3 = vadd.f32 1.0, %v1529_v1 }
 0xe8d   :  { %1530 = vrcp.f32 %v938_v3  ;;  %v950_v15 = vand.u32 2147483648, %v938_v3  ;;  %vm944_vm15 = vweird.f32 %v938_v3  ;;  %v948_v17 = vand.u32 2147483647, %v938_v3 }
 0xe8f   :  { %v951_v19 = vor.u32 1.1754944e-38, %v950_v15  ;;  %vm949_vm2 = vcmp.eq.f32.partialorder %v948_v17, 8.507059e+37 }
 0xe93   :  { %v1531_v4 = vpop.eup %1530 }
 0xe94   :  { %v940_v7 = vmul.f32 %v1531_v4, %v938_v3  ;;  %vm945_vm14 = vweird.f32 %v1531_v4 }
 0xe95   :  { %vm946_vm0 = vmor %vm944_vm15, %vm945_vm14  ;;  %vm1273_vm14 = vcmask 1045504  }
 0xe96   :  { %v941_v11 = vsub.f32 1.0, %v940_v7 }
 0xe98   :  { %v942_v46 = vmul.f32 %v1531_v4, %v941_v11 }
 0xe9a   :  { %v943_v14 = vadd.f32 %v1531_v4, %v942_v46 }
 0xe9c   :  { %v947_v18 = vsel %vm946_vm0, %v1531_v4, %v943_v14 }
 0xe9d   :  { %v952_v21 = vsel %vm949_vm2, %v951_v19, %v947_v18 }
 0xe9e   :  { %v955_v23 = vmul.f32 %v952_v21, %v2102_v41 }
 0xeed   :  { %v1031_v12 = vpop.permute.xlu1 %1030 }
 0xeee   :  { %v2121_v13 = vadd.f32 %v1031_v12, %v1023_v9 }
 0xef0   :  { %1532 = vtanh.f32 %v2121_v13  ;;  %v1159_v46 = vrot.slane %v2121_v13, 7 }
 0xef6   :  { %v1533_v16 = vpop.eup %1532 }
 0xef7   :  { %1036 = vrot.lane.b32.xlu0 %v1533_v16, %s1771_s17 }
 0xefb   :  { %v958_v20 = vpop.permute.xlu0 %957 }
 0xefc   :  { %v960_v22 = vmul.f32 %v958_v20, %v952_v21 }
 0xefe   :  { %962 = vrot.lane.b32.xlu2 %v960_v22, %s1772_s3 }
 0xf58   :  { %v963_v24 = vpop.permute.xlu2 %962 }
 0xf59   :  { %v2127_v25 = vadd.f32 %v963_v24, %v955_v23 }
 0xf5b   :  { %1534 = vtanh.f32 %v2127_v25 }
 0xf61   :  { %v1535_v26 = vpop.eup %1534 }
 0xf62   :  { %968 = vrot.lane.b32.xlu1 %v1535_v26, %s1771_s17 }
 0xf69   :  { %v1037_v28 = vpop.permute.xlu0 %1036 }
 0xf6a   :  { %v1039_v29 = vmul.f32 %v1037_v28, %v1017_v37 }
 0xf6c   :  { %v1045_v30 = vrot.slane %v1039_v29, 6 }
 0xf6e   :  { %1110 = vrot.lane.b32.xlu1 %v1045_v30, %s1772_s3  ;;  %1046 = vrot.lane.b32.xlu0 %v1045_v30, %s1771_s17 }
 0xfd4   :  { %v969_v32 = vpop.permute.xlu1 %968 }
 0xfd5   :  { %v971_v43 = vmul.f32 %v969_v32, %v952_v21 }
 0xfd7   :  { %v1256_v47 = vrot.slane %v971_v43, 3  ;;  %1041 = vrot.lane.b32.xlu2 %v971_v43, %s1772_s3 }
 0xfd9   :  { %v2135_v41 = vsel %vm1271_vm3, %v2111_v45, %v1256_v47  ;;  %vm1275_vm3 = vcmask 1046528  }
 0xfe0   :  { %v1111_v48 = vpop.permute.xlu1 %1110  ;;  %v1047_v50 = vpop.permute.xlu0 %1046 }
 0xfe1   :  { %1411 = vmatmul.msk.f32.vlgmr.msra.gmra.mxu1 %vm154_vm5, %v1111_v48 }
0x1031   :  { %v1042_v51 = vpop.permute.xlu2 %1041 }
0x1032   :  { %v1049_v31 = vsel %vm154_vm5, %v1042_v51, %v1047_v50 }
0x1033   :  { %1409 = vmatmul.msk.f32.vlgmr.msrb.gmra.mxu3 %vm221_vm6, %v1049_v31 }
0x105e   :  { %v1131_v53 = vpop.f32.mrf.mxu1 }
0x105f   :  { %v1135_v40 = vrot.slane %v1131_v53, 1 }
0x1061   :  { %v1137_v27 = vadd.f32 %v1135_v40, %v1874_v10 }
0x1063   :  { %1536 = vtanh.f32 %v1137_v27  ;;  %v1412_v56 = vmul.f32 -1.442695, %v1137_v27 }
0x1065   :  { %1538 = vpow2.f32 %v1412_v56 }
0x1069   :  { %v1537_v55 = vpop.eup %1536 }
0x106a   :  { %1163 = vrot.lane.b32.xlu2 %v1537_v55, %s1771_s17 }
0x106b   :  { %v1539_v45 = vpop.eup %1538 }
0x106c   :  { %v1141_v57 = vadd.f32 1.0, %v1539_v45 }
0x106e   :  { %1540 = vrcp.f32 %v1141_v57  ;;  %v1153_v60 = vand.u32 2147483648, %v1141_v57  ;;  %vm1147_vm7 = vweird.f32 %v1141_v57  ;;  %v1151_v5 = vand.u32 2147483647, %v1141_v57 }
0x1070   :  { %v1154_v61 = vor.u32 1.1754944e-38, %v1153_v60  ;;  %vm1152_vm9 = vcmp.eq.f32.partialorder %v1151_v5, 8.507059e+37 }
0x1074   :  { %v1541_v0 = vpop.eup %1540 }
0x1075   :  { %v1143_v49 = vmul.f32 %v1541_v0, %v1141_v57  ;;  %vm1148_vm4 = vweird.f32 %v1541_v0 }
0x1076   :  { %vm1149_vm8 = vmor %vm1147_vm7, %vm1148_vm4  ;;  %vm1319_vm4 = vcmask 254976  }
0x1077   :  { %v1144_v2 = vsub.f32 1.0, %v1143_v49 }
0x1079   :  { %v1145_v59 = vmul.f32 %v1541_v0, %v1144_v2 }
0x107b   :  { %v1146_v52 = vadd.f32 %v1541_v0, %v1145_v59 }
0x107d   :  { %v1150_v54 = vsel %vm1149_vm8, %v1541_v0, %v1146_v52 }
0x107e   :  { %v1155_v34 = vsel %vm1152_vm9, %v1154_v61, %v1150_v54 }
0x107f   :  { %v1161_v14 = vmul.f32 %v1159_v46, %v1155_v34 }
0x10b6   :  { %v1070_v6 = vpop.f32.mrf.mxu3 }
0x10b7   :  { %v1071_v10 = vadd.f32 %v2145_v58, %v1070_v6 }
0x10b9   :  { %1542 = vtanh.f32 %v1071_v10  ;;  %v1410_v36 = vmul.f32 -1.442695, %v1071_v10 }
0x10bb   :  { %1544 = vpow2.f32 %v1410_v36 }
0x10bf   :  { %v1543_v44 = vpop.eup %1542 }
0x10c0   :  { %1095 = vrot.lane.b32.xlu0 %v1543_v44, %s1771_s17 }
0x10c1   :  { %v1545_v37 = vpop.eup %1544 }
0x10c2   :  { %v1076_v62 = vadd.f32 1.0, %v1545_v37 }
0x10c4   :  { %v1164_v33 = vpop.permute.xlu2 %1163  ;;  %1546 = vrcp.f32 %v1076_v62  ;;  %v1088_v3 = vand.u32 2147483648, %v1076_v62  ;;  %vm1082_vm11 = vweird.f32 %v1076_v62  ;;  %v1086_v4 = vand.u32 2147483647, %v1076_v62 }
0x10c5   :  { %v1166_v35 = vmul.f32 %v1164_v33, %v1155_v34 }
0x10c6   :  { %v1089_v8 = vor.u32 1.1754944e-38, %v1088_v3  ;;  %vm1087_vm13 = vcmp.eq.f32.partialorder %v1086_v4, 8.507059e+37  ;;  %v1431_v3 = vld [vmem:[%s2188_s7] ss:$0 sm:$0xff] }
0x10c7   :  { %1168 = vrot.lane.b32.xlu1 %v1166_v35, %s1772_s3 }
0x10ca   :  { %v1547_v38 = vpop.eup %1546 }
0x10cb   :  { %v1078_v39 = vmul.f32 %v1547_v38, %v1076_v62  ;;  %vm1083_vm10 = vweird.f32 %v1547_v38  ;;  %v1280_v62 = vld [vmem:[#allocation10 + $0x18] sm:$0xff] }
0x10cc   :  { %vm1084_vm12 = vmor %vm1082_vm11, %vm1083_vm10  ;;  %1302 = vmatpush.msra.mxu0 %v1280_v62 }
0x10cd   :  { %v1079_v42 = vsub.f32 1.0, %v1078_v39  ;;  %v1278_v39 = vld [vmem:[#allocation10 + $0x8] sm:$0xff] }
0x10cf   :  { %v1080_v63 = vmul.f32 %v1547_v38, %v1079_v42  ;;  %v1277_v42 = vld [vmem:[#allocation10] sm:$0xff] }
0x10d1   :  { %v1081_v1 = vadd.f32 %v1547_v38, %v1080_v63 }
0x10d3   :  { %v1085_v7 = vsel %vm1084_vm12, %v1547_v38, %v1081_v1  ;;  %v1279_v38 = vld [vmem:[#allocation10 + $0x10] sm:$0xff] }
0x10d4   :  { %v1090_v11 = vsel %vm1087_vm13, %v1089_v8, %v1085_v7  ;;  %1303 = vmatpush.msra.mxu0 %v1279_v38 }
0x10d5   :  { %v1093_v18 = vmul.f32 %v1090_v11, %v2127_v25 }
0x10d6   :  { %1304 = vmatpush.msra.mxu0 %v1278_v39 }
0x10d8   :  { %1305 = vmatpush.msra.mxu0 %v1277_v42 }
0x1132   :  { %v1096_v9 = vpop.permute.xlu0 %1095 }
0x1133   :  { %v1098_v12 = vmul.f32 %v1096_v9, %v1090_v11 }
0x1135   :  { %1100 = vrot.lane.b32.xlu2 %v1098_v12, %s1772_s3 }
0x1139   :  { %v1169_v15 = vpop.permute.xlu1 %1168 }
0x113a   :  { %v1171_v16 = vadd.f32 %v1169_v15, %v1161_v14 }
0x113c   :  { %1548 = vtanh.f32 %v1171_v16  ;;  %v1322_v44 = vrot.slane %v1171_v16, 7 }
0x1142   :  { %v1549_v17 = vpop.eup %1548 }
0x1143   :  { %1174 = vrot.lane.b32.xlu0 %v1549_v17, %s1771_s17 }
0x118f   :  { %v1101_v19 = vpop.permute.xlu2 %1100 }
0x1190   :  { %v1103_v20 = vadd.f32 %v1101_v19, %v1093_v18 }
0x1192   :  { %1550 = vtanh.f32 %v1103_v20 }
0x1198   :  { %v1551_v21 = vpop.eup %1550 }
0x1199   :  { %1106 = vrot.lane.b32.xlu1 %v1551_v21, %s1771_s17 }
0x11b5   :  { %v1175_v22 = vpop.permute.xlu0 %1174 }
0x11b6   :  { %v1177_v23 = vmul.f32 %v1175_v22, %v1155_v34 }
0x11b8   :  { %v1183_v24 = vrot.slane %v1177_v23, 7 }
0x11ba   :  { %1184 = vrot.lane.b32.xlu0 %v1183_v24, %s1771_s17 }
0x120b   :  { %v1107_v13 = vpop.permute.xlu1 %1106 }
0x120c   :  { %v1109_v26 = vmul.f32 %v1107_v13, %v1090_v11 }
0x120e   :  { %v1258_v28 = vrot.slane %v1109_v26, 2  ;;  %1179 = vrot.lane.b32.xlu2 %v1109_v26, %s1772_s3 }
0x1210   :  { %v1274_v29 = vsel %vm1273_vm14, %v2135_v41, %v1258_v28 }
0x122c   :  { %v1185_v25 = vpop.permute.xlu0 %1184 }
0x1268   :  { %v1180_v30 = vpop.permute.xlu2 %1179 }
0x1269   :  { %v1187_v32 = vsel %vm154_vm5, %v1180_v30, %v1185_v25 }
0x126a   :  { %1413 = vmatmul.msk.f32.vlgmr.msrb.gmra.mxu2 %vm221_vm6, %v1187_v32 }
0x12ed   :  { %v1208_v43 = vpop.f32.mrf.mxu2 }
0x12ee   :  { %v1209_v47 = vadd.f32 %v2145_v58, %v1208_v43 }
0x12f0   :  { %1552 = vtanh.f32 %v1209_v47  ;;  %v1414_v50 = vmul.f32 -1.442695, %v1209_v47 }
0x12f2   :  { %1554 = vpow2.f32 %v1414_v50 }
0x12f6   :  { %v1553_v48 = vpop.eup %1552 }
0x12f7   :  { %1233 = vrot.lane.b32.xlu1 %v1553_v48, %s1771_s17 }
0x12f8   :  { %v1555_v51 = vpop.eup %1554 }
0x12f9   :  { %v1214_v31 = vadd.f32 1.0, %v1555_v51 }
0x12fb   :  { %1556 = vrcp.f32 %v1214_v31  ;;  %v1226_v56 = vand.u32 2147483648, %v1214_v31  ;;  %vm1220_vm6 = vweird.f32 %v1214_v31  ;;  %v1224_v45 = vand.u32 2147483647, %v1214_v31 }
0x12fd   :  { %v1227_v0 = vor.u32 1.1754944e-38, %v1226_v56  ;;  %vm1225_vm2 = vcmp.eq.f32.partialorder %v1224_v45, 8.507059e+37 }
0x1301   :  { %v1557_v53 = vpop.eup %1556 }
0x1302   :  { %v1216_v41 = vmul.f32 %v1557_v53, %v1214_v31  ;;  %vm1221_vm15 = vweird.f32 %v1557_v53 }
0x1303   :  { %vm1222_vm0 = vmor %vm1220_vm6, %vm1221_vm15 }
0x1304   :  { %v1217_v40 = vsub.f32 1.0, %v1216_v41 }
0x1306   :  { %v1218_v27 = vmul.f32 %v1557_v53, %v1217_v40 }
0x1308   :  { %v1219_v55 = vadd.f32 %v1557_v53, %v1218_v27 }
0x130a   :  { %v1223_v57 = vsel %vm1222_vm0, %v1557_v53, %v1219_v55 }
0x130b   :  { %v1228_v2 = vsel %vm1225_vm2, %v1227_v0, %v1223_v57 }
0x130c   :  { %v1231_v58 = vmul.f32 %v1228_v2, %v1103_v20 }
0x1369   :  { %v1234_v49 = vpop.permute.xlu1 %1233 }
0x136a   :  { %v1236_v6 = vmul.f32 %v1234_v49, %v1228_v2 }
0x136c   :  { %1238 = vrot.lane.b32.xlu2 %v1236_v6, %s1772_s3 }
0x13c6   :  { %v1239_v10 = vpop.permute.xlu2 %1238 }
0x13c7   :  { %v1241_v59 = vadd.f32 %v1239_v10, %v1231_v58 }
0x13c9   :  { %1558 = vtanh.f32 %v1241_v59  ;;  %v1325_v60 = vrot.slane %v1241_v59, 7 }
0x13cb   :  { %v1327_v5 = vsel %vm1263_vm1, %v1322_v44, %v1325_v60 }
0x13cf   :  { %v1559_v52 = vpop.eup %1558 }
0x13d0   :  { %1244 = vrot.lane.b32.xlu0 %v1559_v52, %s1771_s17 }
0x13d8   :  { %1329 = vrot.lane.b32.xlu0 %v1327_v5, %s1773_s5 }
0x1442   :  { %v1245_v54 = vpop.permute.xlu0 %1244 }
0x1443   :  { %v1247_v61 = vmul.f32 %v1245_v54, %v1228_v2 }
0x1445   :  { %v1261_v33 = vrot.slane %v1247_v61, 1  ;;  %v1312_v34 = vrot.slane %v1247_v61, 7 }
0x1447   :  { %v1314_v35 = vsel %vm1263_vm1, %v1183_v24, %v1312_v34  ;;  %v1276_v36 = vsel %vm1275_vm3, %v1274_v29, %v1261_v33 }
0x1448   :  { %1316 = vrot.lane.b32.xlu2 %v1314_v35, %s1772_s3  ;;  %1286 = vrot.lane.b32.xlu1 %v1276_v36, %s1772_s3 }
0x144a   :  { %v1330_v37 = vpop.permute.xlu0 %1329 }
0x144b   :  { %1332 = vst.msk [vmem:[#allocation14] sm:$0x3] %vm1319_vm4, %v1330_v37 }
0x14a2   :  { %v1317_v63 = vpop.permute.xlu2 %1316 }
0x14a3   :  { %1320 = vst.msk [vmem:[#allocation12] sm:$0x3] %vm1319_vm4, %v1317_v63 }
0x14a4   :  { %1354 = dma.vmem_to_hbm [thread:$0]  %s1350_s23, 32, %s1352_s26, [#allocation13]  }
0x14a5   :  { %1365 = dma.vmem_to_hbm [thread:$0]  %s1361_s1, 32, %s1363_s30, [#allocation13]  }
0x14ba   :  { %v1287_v1 = vpop.permute.xlu1 %1286 }
0x14bb   :  { %1415 = vmatmul.msk.f32.vlgmr.msra.gmra.mxu0 %vm154_vm5, %v1287_v1 }
0x1538   :  { %v1307_v4 = vpop.f32.mrf.mxu0 }
0x1539   :  { %v1308_v7 = vadd.f32 %v1431_v3, %v1307_v4 }
0x153b   :  { %1310 = vst [vmem:[#allocation11] sm:$0xff] %v1308_v7 }
0x153c   :  { %1343 = dma.vmem_to_hbm [thread:$0]  %s1339_s12, 128, %s1341_s15, [#allocation4]  }
0x153d   :  { %1759 = dma.done.wait [#allocation4], 128  }
0x153e   :  { %1760 = vsyncadd [#allocation4], 4294967168 }
0x153f   :  { %1761 = dma.done.wait [#allocation13], 64  }
0x1540   :  { %1762 = vsyncadd [#allocation13], 4294967232 }
0x1541   :  { %1378 = vsyncpa [#allocation3], 1 }
0x1542   :  { %1379 = vsyncpa [#allocation6], 1 }
0x1543   :  { %1380 = vsyncpa [#allocation9], 1 }
0x1544   :  { %1381 = vsyncpa [#allocation4], 1 }
0x1545   :  { %1382 = vsyncpa [#allocation13], 1 }

</bundles_post_ra>
